<compile_context>
chip_gen: v7x
topology: tpu7x:2x2x1
jax: 0.10.0
libtpu: 0.0.40
codegen_flags: <defaults>
</compile_context>

<pallas_src>
import functools

import jax
import jax.numpy as jnp
from jax.experimental import pallas as pl
from jax.experimental.pallas import tpu as pltpu


# -----------------------------------------------------------------------------
# Fused kernel: BlurPool(4x4, stride 2) + Conv3x3 + LeakyReLU + Conv3x3 + LeakyReLU
# -----------------------------------------------------------------------------
def _downlayer_kernel(xp_ref, w1_ref, b1_ref, w2_ref, b2_ref, o_ref,
                      pad1_ref, pad2_ref, *, slope=0.01):
    # xp_ref : [2, 2, OH+1, OW+1, Cp]  parity-decomposed reflect-padded max-pool
    # w1_ref : [9, Cp, Cm] bf16        conv1 weights, one [Cin,Cout] slab per tap
    # b1_ref : [1, Cm]   f32
    # w2_ref : [9, Cm, Cm] bf16
    # b2_ref : [1, Cm]   f32
    # o_ref  : [OH, OW, Cm] f32
    # pad1_ref / pad2_ref : VMEM scratch holding zero-padded conv inputs
    Cp = xp_ref.shape[-1]
    OH, OW, Cm = o_ref.shape
    M = OH * OW

    # ---- BlurPool: binomial 4x4 filter ([1,3,3,1] outer / 64), stride 2.
    # padded[2u+a, 2v+b] == xp[a%2, b%2, u + a//2, v + b//2]  (host parity
    # reshape), so every tap is a unit-stride slice -> pure VPU work, f32.
    f = (1.0 / 8.0, 3.0 / 8.0, 3.0 / 8.0, 1.0 / 8.0)
    blur = jnp.zeros((OH, OW, Cp), jnp.float32)
    for a in range(4):
        for b in range(4):
            tap = xp_ref[a % 2, b % 2,
                         a // 2:a // 2 + OH,
                         b // 2:b // 2 + OW, :]
            blur = blur + (f[a] * f[b]) * tap

    # ---- Conv1 (3x3, pad 1, Cp -> Cm): 9 MXU taps, bf16 inputs / f32 acc.
    pad1_ref[...] = jnp.zeros_like(pad1_ref)
    pad1_ref[1:OH + 1, 1:OW + 1, :] = blur
    acc = jnp.zeros((M, Cm), jnp.float32) + b1_ref[...]
    for kh in range(3):
        for kw in range(3):
            lhs = pad1_ref[kh:kh + OH, kw:kw + OW, :].reshape(M, Cp)
            acc = acc + jnp.dot(lhs.astype(jnp.bfloat16),
                                w1_ref[kh * 3 + kw],
                                preferred_element_type=jnp.float32)
    hid = jnp.maximum(acc, slope * acc)                  # LeakyReLU(0.01)

    # ---- Conv2 (3x3, pad 1, Cm -> Cm) + LeakyReLU.
    pad2_ref[...] = jnp.zeros_like(pad2_ref)
    pad2_ref[1:OH + 1, 1:OW + 1, :] = hid.reshape(OH, OW, Cm)
    acc2 = jnp.zeros((M, Cm), jnp.float32) + b2_ref[...]
    for kh in range(3):
        for kw in range(3):
            lhs = pad2_ref[kh:kh + OH, kw:kw + OW, :].reshape(M, Cm)
            acc2 = acc2 + jnp.dot(lhs.astype(jnp.bfloat16),
                                  w2_ref[kh * 3 + kw],
                                  preferred_element_type=jnp.float32)
    out = jnp.maximum(acc2, slope * acc2)

    o_ref[...] = out.reshape(OH, OW, Cm)


# -----------------------------------------------------------------------------
# One-time parameter preparation (hoisted out of the forward pass).
# -----------------------------------------------------------------------------
def prepare_params(params, in_channels):
    w1, b1, w2, b2 = params                   # PyTorch layouts: [O, I, 3, 3], [O]
    cm = w1.shape[0]
    cp = ((in_channels + 7) // 8) * 8         # pad Cin up to a multiple of 8
    w1k = jnp.transpose(w1, (2, 3, 1, 0)).reshape(9, in_channels, cm)
    w1k = jnp.pad(w1k, ((0, 0), (0, cp - in_channels), (0, 0))).astype(jnp.bfloat16)
    w2k = jnp.transpose(w2, (2, 3, 1, 0)).reshape(9, cm, cm).astype(jnp.bfloat16)
    return {"w1": w1k,
            "b1": b1.reshape(1, cm).astype(jnp.float32),
            "w2": w2k,
            "b2": b2.reshape(1, cm).astype(jnp.float32)}


# -----------------------------------------------------------------------------
# Forward pass (host-side layout prep + single fused pallas_call).
# -----------------------------------------------------------------------------
@jax.jit
def downlayer_forward(x_nchw, kparams):
    w1k, b1 = kparams["w1"], kparams["b1"]
    w2k, b2 = kparams["w2"], kparams["b2"]
    n, cin, h, w = x_nchw.shape
    cp, cm = w1k.shape[1], w1k.shape[2]

    x = jnp.transpose(x_nchw, (0, 2, 3, 1)).astype(jnp.float32)   # NHWC

    # nn.MaxPool2d(kernel_size=2, stride=1): [N, H-1, W-1, C]
    m = jnp.maximum(jnp.maximum(x[:, :-1, :-1, :], x[:, :-1, 1:, :]),
                    jnp.maximum(x[:, 1:, :-1, :], x[:, 1:, 1:, :]))

    # BlurPool reflect padding for filt_size=4: (left 1, right 2, top 1, bottom 2)
    p = jnp.pad(m, ((0, 0), (1, 2), (1, 2), (0, 0)), mode="reflect")
    if cp != cin:
        p = jnp.pad(p, ((0, 0), (0, 0), (0, 0), (0, cp - cin)))

    # Parity-decompose so the kernel's stride-2 blur taps become unit-stride:
    #   xp[n, ph, pw, R, S, c] = padded[n, 2R+ph, 2S+pw, c]
    hp, wp = p.shape[1], p.shape[2]            # H+2, W+2 (even)
    hh, wh = hp // 2, wp // 2                  # = OH+1, OW+1
    xp = p.reshape(n, hh, 2, wh, 2, cp).transpose(0, 2, 4, 1, 3, 5)

    oh, ow = hh - 1, wh - 1

    out_nhwc = pl.pallas_call(
        functools.partial(_downlayer_kernel, slope=0.01),
        out_shape=jax.ShapeDtypeStruct((n, oh, ow, cm), jnp.float32),
        grid_spec=pltpu.PrefetchScalarGridSpec(
            num_scalar_prefetch=0,
            grid=(n,),
            in_specs=[
                pl.BlockSpec((None, 2, 2, hh, wh, cp),
                             lambda i: (i, 0, 0, 0, 0, 0)),
                pl.BlockSpec((9, cp, cm), lambda i: (0, 0, 0)),
                pl.BlockSpec((1, cm), lambda i: (0, 0)),
                pl.BlockSpec((9, cm, cm), lambda i: (0, 0, 0)),
                pl.BlockSpec((1, cm), lambda i: (0, 0)),
            ],
            out_specs=pl.BlockSpec((None, oh, ow, cm),
                                   lambda i: (i, 0, 0, 0)),
            scratch_shapes=[
                pltpu.VMEM((oh + 2, ow + 2, cp), jnp.float32),
                pltpu.VMEM((oh + 2, ow + 2, cm), jnp.float32),
            ],
        ),
        compiler_params=pltpu.CompilerParams(
            dimension_semantics=("parallel",)),
    )(xp, w1k, b1, w2k, b2)

    return jnp.transpose(out_nhwc, (0, 3, 1, 2))                  # NCHW


# -----------------------------------------------------------------------------
# Plain-JAX reference (mirrors the PyTorch module) and deterministic init.
# -----------------------------------------------------------------------------
def _reference_forward(x_nchw, params):
    w1, b1, w2, b2 = params
    cin = x_nchw.shape[1]
    x = x_nchw.astype(jnp.float32)
    m = jnp.maximum(jnp.maximum(x[:, :, :-1, :-1], x[:, :, :-1, 1:]),
                    jnp.maximum(x[:, :, 1:, :-1], x[:, :, 1:, 1:]))
    p = jnp.pad(m, ((0, 0), (0, 0), (1, 2), (1, 2)), mode="reflect")
    a = jnp.array([1.0, 3.0, 3.0, 1.0], jnp.float32)
    filt = jnp.tile((jnp.outer(a, a) / 64.0)[None, None], (cin, 1, 1, 1))
    dn = ("NCHW", "OIHW", "NCHW")
    blur = jax.lax.conv_general_dilated(p, filt, (2, 2), "VALID",
                                        feature_group_count=cin,
                                        dimension_numbers=dn)
    y = jax.lax.conv_general_dilated(blur, w1, (1, 1), ((1, 1), (1, 1)),
                                     dimension_numbers=dn) + b1[None, :, None, None]
    y = jnp.where(y > 0, y, 0.01 * y)
    y = jax.lax.conv_general_dilated(y, w2, (1, 1), ((1, 1), (1, 1)),
                                     dimension_numbers=dn) + b2[None, :, None, None]
    y = jnp.where(y > 0, y, 0.01 * y)
    return y


def init_params(key, in_channels, out_channels):
    k1, k2, k3, k4 = jax.random.split(key, 4)
    w1 = 0.05 * jax.random.normal(k1, (out_channels, in_channels, 3, 3), jnp.float32)
    b1 = 0.05 * jax.random.normal(k2, (out_channels,), jnp.float32)
    w2 = 0.05 * jax.random.normal(k3, (out_channels, out_channels, 3, 3), jnp.float32)
    b2 = 0.05 * jax.random.normal(k4, (out_channels,), jnp.float32)
    return (w1, b1, w2, b2)


if __name__ == "__main__":
    key = jax.random.PRNGKey(0)
    kx, kp = jax.random.split(key)
    IN_C, OUT_C = 4, 32
    x = jax.random.normal(kx, (2, IN_C, 16, 16), jnp.float32)     # NCHW like PyTorch
    params = init_params(kp, IN_C, OUT_C)

    kparams = prepare_params(params, IN_C)                         # hoisted re-layout
    out = jax.block_until_ready(downlayer_forward(x, kparams))

    assert out.shape == (2, OUT_C, 8, 8), out.shape
    assert bool(jnp.all(jnp.isfinite(out)))

    ref = _reference_forward(x, params)
    assert bool(jnp.allclose(out, ref, atol=5e-2, rtol=5e-2)), (
        float(jnp.max(jnp.abs(out - ref))))

    print("KERNEL_OK")
</pallas_src>

<mosaic_0001>
module attributes {stable_mosaic.version = 11 : i64} {
  func.func @_downlayer_kernel(%arg0: i32, %arg1: memref<1x2x2x9x9x8xf32, #tpu.memory_space<vmem>>, %arg2: memref<9x8x32xbf16, #tpu.memory_space<vmem>>, %arg3: memref<1x32xf32, #tpu.memory_space<vmem>>, %arg4: memref<9x32x32xbf16, #tpu.memory_space<vmem>>, %arg5: memref<1x32xf32, #tpu.memory_space<vmem>>, %arg6: memref<1x8x8x32xf32, #tpu.memory_space<vmem>>, %arg7: memref<10x10x8xf32, #tpu.memory_space<vmem>>, %arg8: memref<10x10x32xf32, #tpu.memory_space<vmem>>) attributes {dimension_semantics = [#tpu.dimension_semantics<parallel>], iteration_bounds = array<i64: 2>, scalar_prefetch = 0 : i64, scratch_operands = 2 : i64, tpu.core_type = #tpu.core_type<tc>, window_params = [{transform_indices = @transform_0, window_bounds = array<i64: 1, 2, 2, 9, 9, 8>}, {pipeline_mode = #tpu.pipeline_mode<synchronous>, transform_indices = @transform_1, window_bounds = array<i64: 9, 8, 32>}, {pipeline_mode = #tpu.pipeline_mode<synchronous>, transform_indices = @transform_2, window_bounds = array<i64: 1, 32>}, {pipeline_mode = #tpu.pipeline_mode<synchronous>, transform_indices = @transform_3, window_bounds = array<i64: 9, 32, 32>}, {pipeline_mode = #tpu.pipeline_mode<synchronous>, transform_indices = @transform_4, window_bounds = array<i64: 1, 32>}, {transform_indices = @transform_5, window_bounds = array<i64: 1, 8, 8, 32>}]} {
    %cst = arith.constant 0.000000e+00 : f32
    %0 = vector.broadcast %cst : f32 to vector<8x8x8xf32>
    %c0 = arith.constant 0 : index
    %c0_0 = arith.constant 0 : index
    %c0_1 = arith.constant 0 : index
    %c0_2 = arith.constant 0 : index
    %c0_3 = arith.constant 0 : index
    %c0_4 = arith.constant 0 : index
    %1 = vector.load %arg1[%c0, %c0_0, %c0_1, %c0_2, %c0_3, %c0_4] : memref<1x2x2x9x9x8xf32, #tpu.memory_space<vmem>>, vector<1x1x1x8x8x8xf32>
    %2 = vector.shape_cast %1 : vector<1x1x1x8x8x8xf32> to vector<8x8x8xf32>
    %cst_5 = arith.constant 1.562500e-02 : f32
    %3 = vector.broadcast %cst_5 : f32 to vector<8x8x8xf32>
    %4 = arith.mulf %3, %2 : vector<8x8x8xf32>
    %5 = arith.addf %0, %4 : vector<8x8x8xf32>
    %c0_6 = arith.constant 0 : index
    %c0_7 = arith.constant 0 : index
    %c1 = arith.constant 1 : index
    %c0_8 = arith.constant 0 : index
    %c0_9 = arith.constant 0 : index
    %c0_10 = arith.constant 0 : index
    %6 = vector.load %arg1[%c0_6, %c0_7, %c1, %c0_8, %c0_9, %c0_10] : memref<1x2x2x9x9x8xf32, #tpu.memory_space<vmem>>, vector<1x1x1x8x8x8xf32>
    %7 = vector.shape_cast %6 : vector<1x1x1x8x8x8xf32> to vector<8x8x8xf32>
    %cst_11 = arith.constant 4.687500e-02 : f32
    %8 = vector.broadcast %cst_11 : f32 to vector<8x8x8xf32>
    %9 = arith.mulf %8, %7 : vector<8x8x8xf32>
    %10 = arith.addf %5, %9 : vector<8x8x8xf32>
    %c0_12 = arith.constant 0 : index
    %c0_13 = arith.constant 0 : index
    %c0_14 = arith.constant 0 : index
    %c0_15 = arith.constant 0 : index
    %c1_16 = arith.constant 1 : index
    %c0_17 = arith.constant 0 : index
    %11 = vector.load %arg1[%c0_12, %c0_13, %c0_14, %c0_15, %c1_16, %c0_17] : memref<1x2x2x9x9x8xf32, #tpu.memory_space<vmem>>, vector<1x1x1x8x8x8xf32>
    %12 = vector.shape_cast %11 : vector<1x1x1x8x8x8xf32> to vector<8x8x8xf32>
    %cst_18 = arith.constant 4.687500e-02 : f32
    %13 = vector.broadcast %cst_18 : f32 to vector<8x8x8xf32>
    %14 = arith.mulf %13, %12 : vector<8x8x8xf32>
    %15 = arith.addf %10, %14 : vector<8x8x8xf32>
    %c0_19 = arith.constant 0 : index
    %c0_20 = arith.constant 0 : index
    %c1_21 = arith.constant 1 : index
    %c0_22 = arith.constant 0 : index
    %c1_23 = arith.constant 1 : index
    %c0_24 = arith.constant 0 : index
    %16 = vector.load %arg1[%c0_19, %c0_20, %c1_21, %c0_22, %c1_23, %c0_24] : memref<1x2x2x9x9x8xf32, #tpu.memory_space<vmem>>, vector<1x1x1x8x8x8xf32>
    %17 = vector.shape_cast %16 : vector<1x1x1x8x8x8xf32> to vector<8x8x8xf32>
    %cst_25 = arith.constant 1.562500e-02 : f32
    %18 = vector.broadcast %cst_25 : f32 to vector<8x8x8xf32>
    %19 = arith.mulf %18, %17 : vector<8x8x8xf32>
    %20 = arith.addf %15, %19 : vector<8x8x8xf32>
    %c0_26 = arith.constant 0 : index
    %c1_27 = arith.constant 1 : index
    %c0_28 = arith.constant 0 : index
    %c0_29 = arith.constant 0 : index
    %c0_30 = arith.constant 0 : index
    %c0_31 = arith.constant 0 : index
    %21 = vector.load %arg1[%c0_26, %c1_27, %c0_28, %c0_29, %c0_30, %c0_31] : memref<1x2x2x9x9x8xf32, #tpu.memory_space<vmem>>, vector<1x1x1x8x8x8xf32>
    %22 = vector.shape_cast %21 : vector<1x1x1x8x8x8xf32> to vector<8x8x8xf32>
    %cst_32 = arith.constant 4.687500e-02 : f32
    %23 = vector.broadcast %cst_32 : f32 to vector<8x8x8xf32>
    %24 = arith.mulf %23, %22 : vector<8x8x8xf32>
    %25 = arith.addf %20, %24 : vector<8x8x8xf32>
    %c0_33 = arith.constant 0 : index
    %c1_34 = arith.constant 1 : index
    %c1_35 = arith.constant 1 : index
    %c0_36 = arith.constant 0 : index
    %c0_37 = arith.constant 0 : index
    %c0_38 = arith.constant 0 : index
    %26 = vector.load %arg1[%c0_33, %c1_34, %c1_35, %c0_36, %c0_37, %c0_38] : memref<1x2x2x9x9x8xf32, #tpu.memory_space<vmem>>, vector<1x1x1x8x8x8xf32>
    %27 = vector.shape_cast %26 : vector<1x1x1x8x8x8xf32> to vector<8x8x8xf32>
    %cst_39 = arith.constant 1.406250e-01 : f32
    %28 = vector.broadcast %cst_39 : f32 to vector<8x8x8xf32>
    %29 = arith.mulf %28, %27 : vector<8x8x8xf32>
    %30 = arith.addf %25, %29 : vector<8x8x8xf32>
    %c0_40 = arith.constant 0 : index
    %c1_41 = arith.constant 1 : index
    %c0_42 = arith.constant 0 : index
    %c0_43 = arith.constant 0 : index
    %c1_44 = arith.constant 1 : index
    %c0_45 = arith.constant 0 : index
    %31 = vector.load %arg1[%c0_40, %c1_41, %c0_42, %c0_43, %c1_44, %c0_45] : memref<1x2x2x9x9x8xf32, #tpu.memory_space<vmem>>, vector<1x1x1x8x8x8xf32>
    %32 = vector.shape_cast %31 : vector<1x1x1x8x8x8xf32> to vector<8x8x8xf32>
    %cst_46 = arith.constant 1.406250e-01 : f32
    %33 = vector.broadcast %cst_46 : f32 to vector<8x8x8xf32>
    %34 = arith.mulf %33, %32 : vector<8x8x8xf32>
    %35 = arith.addf %30, %34 : vector<8x8x8xf32>
    %c0_47 = arith.constant 0 : index
    %c1_48 = arith.constant 1 : index
    %c1_49 = arith.constant 1 : index
    %c0_50 = arith.constant 0 : index
    %c1_51 = arith.constant 1 : index
    %c0_52 = arith.constant 0 : index
    %36 = vector.load %arg1[%c0_47, %c1_48, %c1_49, %c0_50, %c1_51, %c0_52] : memref<1x2x2x9x9x8xf32, #tpu.memory_space<vmem>>, vector<1x1x1x8x8x8xf32>
    %37 = vector.shape_cast %36 : vector<1x1x1x8x8x8xf32> to vector<8x8x8xf32>
    %cst_53 = arith.constant 4.687500e-02 : f32
    %38 = vector.broadcast %cst_53 : f32 to vector<8x8x8xf32>
    %39 = arith.mulf %38, %37 : vector<8x8x8xf32>
    %40 = arith.addf %35, %39 : vector<8x8x8xf32>
    %c0_54 = arith.constant 0 : index
    %c0_55 = arith.constant 0 : index
    %c0_56 = arith.constant 0 : index
    %c1_57 = arith.constant 1 : index
    %c0_58 = arith.constant 0 : index
    %c0_59 = arith.constant 0 : index
    %41 = vector.load %arg1[%c0_54, %c0_55, %c0_56, %c1_57, %c0_58, %c0_59] : memref<1x2x2x9x9x8xf32, #tpu.memory_space<vmem>>, vector<1x1x1x8x8x8xf32>
    %42 = vector.shape_cast %41 : vector<1x1x1x8x8x8xf32> to vector<8x8x8xf32>
    %cst_60 = arith.constant 4.687500e-02 : f32
    %43 = vector.broadcast %cst_60 : f32 to vector<8x8x8xf32>
    %44 = arith.mulf %43, %42 : vector<8x8x8xf32>
    %45 = arith.addf %40, %44 : vector<8x8x8xf32>
    %c0_61 = arith.constant 0 : index
    %c0_62 = arith.constant 0 : index
    %c1_63 = arith.constant 1 : index
    %c1_64 = arith.constant 1 : index
    %c0_65 = arith.constant 0 : index
    %c0_66 = arith.constant 0 : index
    %46 = vector.load %arg1[%c0_61, %c0_62, %c1_63, %c1_64, %c0_65, %c0_66] : memref<1x2x2x9x9x8xf32, #tpu.memory_space<vmem>>, vector<1x1x1x8x8x8xf32>
    %47 = vector.shape_cast %46 : vector<1x1x1x8x8x8xf32> to vector<8x8x8xf32>
    %cst_67 = arith.constant 1.406250e-01 : f32
    %48 = vector.broadcast %cst_67 : f32 to vector<8x8x8xf32>
    %49 = arith.mulf %48, %47 : vector<8x8x8xf32>
    %50 = arith.addf %45, %49 : vector<8x8x8xf32>
    %c0_68 = arith.constant 0 : index
    %c0_69 = arith.constant 0 : index
    %c0_70 = arith.constant 0 : index
    %c1_71 = arith.constant 1 : index
    %c1_72 = arith.constant 1 : index
    %c0_73 = arith.constant 0 : index
    %51 = vector.load %arg1[%c0_68, %c0_69, %c0_70, %c1_71, %c1_72, %c0_73] : memref<1x2x2x9x9x8xf32, #tpu.memory_space<vmem>>, vector<1x1x1x8x8x8xf32>
    %52 = vector.shape_cast %51 : vector<1x1x1x8x8x8xf32> to vector<8x8x8xf32>
    %cst_74 = arith.constant 1.406250e-01 : f32
    %53 = vector.broadcast %cst_74 : f32 to vector<8x8x8xf32>
    %54 = arith.mulf %53, %52 : vector<8x8x8xf32>
    %55 = arith.addf %50, %54 : vector<8x8x8xf32>
    %c0_75 = arith.constant 0 : index
    %c0_76 = arith.constant 0 : index
    %c1_77 = arith.constant 1 : index
    %c1_78 = arith.constant 1 : index
    %c1_79 = arith.constant 1 : index
    %c0_80 = arith.constant 0 : index
    %56 = vector.load %arg1[%c0_75, %c0_76, %c1_77, %c1_78, %c1_79, %c0_80] : memref<1x2x2x9x9x8xf32, #tpu.memory_space<vmem>>, vector<1x1x1x8x8x8xf32>
    %57 = vector.shape_cast %56 : vector<1x1x1x8x8x8xf32> to vector<8x8x8xf32>
    %cst_81 = arith.constant 4.687500e-02 : f32
    %58 = vector.broadcast %cst_81 : f32 to vector<8x8x8xf32>
    %59 = arith.mulf %58, %57 : vector<8x8x8xf32>
    %60 = arith.addf %55, %59 : vector<8x8x8xf32>
    %c0_82 = arith.constant 0 : index
    %c1_83 = arith.constant 1 : index
    %c0_84 = arith.constant 0 : index
    %c1_85 = arith.constant 1 : index
    %c0_86 = arith.constant 0 : index
    %c0_87 = arith.constant 0 : index
    %61 = vector.load %arg1[%c0_82, %c1_83, %c0_84, %c1_85, %c0_86, %c0_87] : memref<1x2x2x9x9x8xf32, #tpu.memory_space<vmem>>, vector<1x1x1x8x8x8xf32>
    %62 = vector.shape_cast %61 : vector<1x1x1x8x8x8xf32> to vector<8x8x8xf32>
    %cst_88 = arith.constant 1.562500e-02 : f32
    %63 = vector.broadcast %cst_88 : f32 to vector<8x8x8xf32>
    %64 = arith.mulf %63, %62 : vector<8x8x8xf32>
    %65 = arith.addf %60, %64 : vector<8x8x8xf32>
    %c0_89 = arith.constant 0 : index
    %c1_90 = arith.constant 1 : index
    %c1_91 = arith.constant 1 : index
    %c1_92 = arith.constant 1 : index
    %c0_93 = arith.constant 0 : index
    %c0_94 = arith.constant 0 : index
    %66 = vector.load %arg1[%c0_89, %c1_90, %c1_91, %c1_92, %c0_93, %c0_94] : memref<1x2x2x9x9x8xf32, #tpu.memory_space<vmem>>, vector<1x1x1x8x8x8xf32>
    %67 = vector.shape_cast %66 : vector<1x1x1x8x8x8xf32> to vector<8x8x8xf32>
    %cst_95 = arith.constant 4.687500e-02 : f32
    %68 = vector.broadcast %cst_95 : f32 to vector<8x8x8xf32>
    %69 = arith.mulf %68, %67 : vector<8x8x8xf32>
    %70 = arith.addf %65, %69 : vector<8x8x8xf32>
    %c0_96 = arith.constant 0 : index
    %c1_97 = arith.constant 1 : index
    %c0_98 = arith.constant 0 : index
    %c1_99 = arith.constant 1 : index
    %c1_100 = arith.constant 1 : index
    %c0_101 = arith.constant 0 : index
    %71 = vector.load %arg1[%c0_96, %c1_97, %c0_98, %c1_99, %c1_100, %c0_101] : memref<1x2x2x9x9x8xf32, #tpu.memory_space<vmem>>, vector<1x1x1x8x8x8xf32>
    %72 = vector.shape_cast %71 : vector<1x1x1x8x8x8xf32> to vector<8x8x8xf32>
    %cst_102 = arith.constant 4.687500e-02 : f32
    %73 = vector.broadcast %cst_102 : f32 to vector<8x8x8xf32>
    %74 = arith.mulf %73, %72 : vector<8x8x8xf32>
    %75 = arith.addf %70, %74 : vector<8x8x8xf32>
    %c0_103 = arith.constant 0 : index
    %c1_104 = arith.constant 1 : index
    %c1_105 = arith.constant 1 : index
    %c1_106 = arith.constant 1 : index
    %c1_107 = arith.constant 1 : index
    %c0_108 = arith.constant 0 : index
    %76 = vector.load %arg1[%c0_103, %c1_104, %c1_105, %c1_106, %c1_107, %c0_108] : memref<1x2x2x9x9x8xf32, #tpu.memory_space<vmem>>, vector<1x1x1x8x8x8xf32>
    %77 = vector.shape_cast %76 : vector<1x1x1x8x8x8xf32> to vector<8x8x8xf32>
    %cst_109 = arith.constant 1.562500e-02 : f32
    %78 = vector.broadcast %cst_109 : f32 to vector<8x8x8xf32>
    %79 = arith.mulf %78, %77 : vector<8x8x8xf32>
    %80 = arith.addf %75, %79 : vector<8x8x8xf32>
    %cst_110 = arith.constant 0.000000e+00 : f32
    %81 = vector.broadcast %cst_110 : f32 to vector<10x10x8xf32>
    %c0_111 = arith.constant 0 : index
    %c0_112 = arith.constant 0 : index
    %c0_113 = arith.constant 0 : index
    %82 = vector.load %arg7[%c0_111, %c0_112, %c0_113] : memref<10x10x8xf32, #tpu.memory_space<vmem>>, vector<10x10x8xf32>
    tpu.vector_store %arg7[%c0_111, %c0_112, %c0_113], %81 {strides = array<i32>} : memref<10x10x8xf32, #tpu.memory_space<vmem>>, vector<10x10x8xf32>,
    %c1_114 = arith.constant 1 : index
    %c1_115 = arith.constant 1 : index
    %c0_116 = arith.constant 0 : index
    %83 = vector.load %arg7[%c1_114, %c1_115, %c0_116] : memref<10x10x8xf32, #tpu.memory_space<vmem>>, vector<8x8x8xf32>
    tpu.vector_store %arg7[%c1_114, %c1_115, %c0_116], %80 {strides = array<i32>} : memref<10x10x8xf32, #tpu.memory_space<vmem>>, vector<8x8x8xf32>,
    %cst_117 = arith.constant 0.000000e+00 : f32
    %84 = vector.broadcast %cst_117 : f32 to vector<64x32xf32>
    %c0_118 = arith.constant 0 : index
    %c0_119 = arith.constant 0 : index
    %85 = vector.load %arg3[%c0_118, %c0_119] : memref<1x32xf32, #tpu.memory_space<vmem>>, vector<1x32xf32>
    %86 = vector.broadcast %85 : vector<1x32xf32> to vector<64x32xf32>
    %87 = arith.addf %84, %86 : vector<64x32xf32>
    %c0_120 = arith.constant 0 : index
    %c0_121 = arith.constant 0 : index
    %c0_122 = arith.constant 0 : index
    %88 = vector.load %arg7[%c0_120, %c0_121, %c0_122] : memref<10x10x8xf32, #tpu.memory_space<vmem>>, vector<8x8x8xf32>
    %89 = vector.shape_cast %88 : vector<8x8x8xf32> to vector<64x8xf32>
    %90 = arith.truncf %89 : vector<64x8xf32> to vector<64x8xbf16>
    %c0_123 = arith.constant 0 : index
    %c0_124 = arith.constant 0 : index
    %c0_125 = arith.constant 0 : index
    %91 = vector.load %arg2[%c0_123, %c0_124, %c0_125] : memref<9x8x32xbf16, #tpu.memory_space<vmem>>, vector<1x8x32xbf16>
    %92 = vector.shape_cast %91 : vector<1x8x32xbf16> to vector<8x32xbf16>
    %cst_126 = arith.constant dense<0.000000e+00> : vector<64x32xf32>
    %93 = tpu.matmul %90, %92, %cst_126 {dimension_numbers = #tpu.dot_dimension_numbers<[1], [0], [0], [1], [0, 0, 1, 1], [], []>} : vector<64x8xbf16>, vector<8x32xbf16>, vector<64x32xf32> -> vector<64x32xf32>
    %94 = arith.addf %87, %93 : vector<64x32xf32>
    %c0_127 = arith.constant 0 : index
    %c1_128 = arith.constant 1 : index
    %c0_129 = arith.constant 0 : index
    %95 = vector.load %arg7[%c0_127, %c1_128, %c0_129] : memref<10x10x8xf32, #tpu.memory_space<vmem>>, vector<8x8x8xf32>
    %96 = vector.shape_cast %95 : vector<8x8x8xf32> to vector<64x8xf32>
    %97 = arith.truncf %96 : vector<64x8xf32> to vector<64x8xbf16>
    %c1_130 = arith.constant 1 : index
    %c0_131 = arith.constant 0 : index
    %c0_132 = arith.constant 0 : index
    %98 = vector.load %arg2[%c1_130, %c0_131, %c0_132] : memref<9x8x32xbf16, #tpu.memory_space<vmem>>, vector<1x8x32xbf16>
    %99 = vector.shape_cast %98 : vector<1x8x32xbf16> to vector<8x32xbf16>
    %cst_133 = arith.constant dense<0.000000e+00> : vector<64x32xf32>
    %100 = tpu.matmul %97, %99, %cst_133 {dimension_numbers = #tpu.dot_dimension_numbers<[1], [0], [0], [1], [0, 0, 1, 1], [], []>} : vector<64x8xbf16>, vector<8x32xbf16>, vector<64x32xf32> -> vector<64x32xf32>
    %101 = arith.addf %94, %100 : vector<64x32xf32>
    %c0_134 = arith.constant 0 : index
    %c2 = arith.constant 2 : index
    %c0_135 = arith.constant 0 : index
    %102 = vector.load %arg7[%c0_134, %c2, %c0_135] : memref<10x10x8xf32, #tpu.memory_space<vmem>>, vector<8x8x8xf32>
    %103 = vector.shape_cast %102 : vector<8x8x8xf32> to vector<64x8xf32>
    %104 = arith.truncf %103 : vector<64x8xf32> to vector<64x8xbf16>
    %c2_136 = arith.constant 2 : index
    %c0_137 = arith.constant 0 : index
    %c0_138 = arith.constant 0 : index
    %105 = vector.load %arg2[%c2_136, %c0_137, %c0_138] : memref<9x8x32xbf16, #tpu.memory_space<vmem>>, vector<1x8x32xbf16>
    %106 = vector.shape_cast %105 : vector<1x8x32xbf16> to vector<8x32xbf16>
    %cst_139 = arith.constant dense<0.000000e+00> : vector<64x32xf32>
    %107 = tpu.matmul %104, %106, %cst_139 {dimension_numbers = #tpu.dot_dimension_numbers<[1], [0], [0], [1], [0, 0, 1, 1], [], []>} : vector<64x8xbf16>, vector<8x32xbf16>, vector<64x32xf32> -> vector<64x32xf32>
    %108 = arith.addf %101, %107 : vector<64x32xf32>
    %c1_140 = arith.constant 1 : index
    %c0_141 = arith.constant 0 : index
    %c0_142 = arith.constant 0 : index
    %109 = vector.load %arg7[%c1_140, %c0_141, %c0_142] : memref<10x10x8xf32, #tpu.memory_space<vmem>>, vector<8x8x8xf32>
    %110 = vector.shape_cast %109 : vector<8x8x8xf32> to vector<64x8xf32>
    %111 = arith.truncf %110 : vector<64x8xf32> to vector<64x8xbf16>
    %c3 = arith.constant 3 : index
    %c0_143 = arith.constant 0 : index
    %c0_144 = arith.constant 0 : index
    %112 = vector.load %arg2[%c3, %c0_143, %c0_144] : memref<9x8x32xbf16, #tpu.memory_space<vmem>>, vector<1x8x32xbf16>
    %113 = vector.shape_cast %112 : vector<1x8x32xbf16> to vector<8x32xbf16>
    %cst_145 = arith.constant dense<0.000000e+00> : vector<64x32xf32>
    %114 = tpu.matmul %111, %113, %cst_145 {dimension_numbers = #tpu.dot_dimension_numbers<[1], [0], [0], [1], [0, 0, 1, 1], [], []>} : vector<64x8xbf16>, vector<8x32xbf16>, vector<64x32xf32> -> vector<64x32xf32>
    %115 = arith.addf %108, %114 : vector<64x32xf32>
    %c1_146 = arith.constant 1 : index
    %c1_147 = arith.constant 1 : index
    %c0_148 = arith.constant 0 : index
    %116 = vector.load %arg7[%c1_146, %c1_147, %c0_148] : memref<10x10x8xf32, #tpu.memory_space<vmem>>, vector<8x8x8xf32>
    %117 = vector.shape_cast %116 : vector<8x8x8xf32> to vector<64x8xf32>
    %118 = arith.truncf %117 : vector<64x8xf32> to vector<64x8xbf16>
    %c4 = arith.constant 4 : index
    %c0_149 = arith.constant 0 : index
    %c0_150 = arith.constant 0 : index
    %119 = vector.load %arg2[%c4, %c0_149, %c0_150] : memref<9x8x32xbf16, #tpu.memory_space<vmem>>, vector<1x8x32xbf16>
    %120 = vector.shape_cast %119 : vector<1x8x32xbf16> to vector<8x32xbf16>
    %cst_151 = arith.constant dense<0.000000e+00> : vector<64x32xf32>
    %121 = tpu.matmul %118, %120, %cst_151 {dimension_numbers = #tpu.dot_dimension_numbers<[1], [0], [0], [1], [0, 0, 1, 1], [], []>} : vector<64x8xbf16>, vector<8x32xbf16>, vector<64x32xf32> -> vector<64x32xf32>
    %122 = arith.addf %115, %121 : vector<64x32xf32>
    %c1_152 = arith.constant 1 : index
    %c2_153 = arith.constant 2 : index
    %c0_154 = arith.constant 0 : index
    %123 = vector.load %arg7[%c1_152, %c2_153, %c0_154] : memref<10x10x8xf32, #tpu.memory_space<vmem>>, vector<8x8x8xf32>
    %124 = vector.shape_cast %123 : vector<8x8x8xf32> to vector<64x8xf32>
    %125 = arith.truncf %124 : vector<64x8xf32> to vector<64x8xbf16>
    %c5 = arith.constant 5 : index
    %c0_155 = arith.constant 0 : index
    %c0_156 = arith.constant 0 : index
    %126 = vector.load %arg2[%c5, %c0_155, %c0_156] : memref<9x8x32xbf16, #tpu.memory_space<vmem>>, vector<1x8x32xbf16>
    %127 = vector.shape_cast %126 : vector<1x8x32xbf16> to vector<8x32xbf16>
    %cst_157 = arith.constant dense<0.000000e+00> : vector<64x32xf32>
    %128 = tpu.matmul %125, %127, %cst_157 {dimension_numbers = #tpu.dot_dimension_numbers<[1], [0], [0], [1], [0, 0, 1, 1], [], []>} : vector<64x8xbf16>, vector<8x32xbf16>, vector<64x32xf32> -> vector<64x32xf32>
    %129 = arith.addf %122, %128 : vector<64x32xf32>
    %c2_158 = arith.constant 2 : index
    %c0_159 = arith.constant 0 : index
    %c0_160 = arith.constant 0 : index
    %130 = vector.load %arg7[%c2_158, %c0_159, %c0_160] : memref<10x10x8xf32, #tpu.memory_space<vmem>>, vector<8x8x8xf32>
    %131 = vector.shape_cast %130 : vector<8x8x8xf32> to vector<64x8xf32>
    %132 = arith.truncf %131 : vector<64x8xf32> to vector<64x8xbf16>
    %c6 = arith.constant 6 : index
    %c0_161 = arith.constant 0 : index
    %c0_162 = arith.constant 0 : index
    %133 = vector.load %arg2[%c6, %c0_161, %c0_162] : memref<9x8x32xbf16, #tpu.memory_space<vmem>>, vector<1x8x32xbf16>
    %134 = vector.shape_cast %133 : vector<1x8x32xbf16> to vector<8x32xbf16>
    %cst_163 = arith.constant dense<0.000000e+00> : vector<64x32xf32>
    %135 = tpu.matmul %132, %134, %cst_163 {dimension_numbers = #tpu.dot_dimension_numbers<[1], [0], [0], [1], [0, 0, 1, 1], [], []>} : vector<64x8xbf16>, vector<8x32xbf16>, vector<64x32xf32> -> vector<64x32xf32>
    %136 = arith.addf %129, %135 : vector<64x32xf32>
    %c2_164 = arith.constant 2 : index
    %c1_165 = arith.constant 1 : index
    %c0_166 = arith.constant 0 : index
    %137 = vector.load %arg7[%c2_164, %c1_165, %c0_166] : memref<10x10x8xf32, #tpu.memory_space<vmem>>, vector<8x8x8xf32>
    %138 = vector.shape_cast %137 : vector<8x8x8xf32> to vector<64x8xf32>
    %139 = arith.truncf %138 : vector<64x8xf32> to vector<64x8xbf16>
    %c7 = arith.constant 7 : index
    %c0_167 = arith.constant 0 : index
    %c0_168 = arith.constant 0 : index
    %140 = vector.load %arg2[%c7, %c0_167, %c0_168] : memref<9x8x32xbf16, #tpu.memory_space<vmem>>, vector<1x8x32xbf16>
    %141 = vector.shape_cast %140 : vector<1x8x32xbf16> to vector<8x32xbf16>
    %cst_169 = arith.constant dense<0.000000e+00> : vector<64x32xf32>
    %142 = tpu.matmul %139, %141, %cst_169 {dimension_numbers = #tpu.dot_dimension_numbers<[1], [0], [0], [1], [0, 0, 1, 1], [], []>} : vector<64x8xbf16>, vector<8x32xbf16>, vector<64x32xf32> -> vector<64x32xf32>
    %143 = arith.addf %136, %142 : vector<64x32xf32>
    %c2_170 = arith.constant 2 : index
    %c2_171 = arith.constant 2 : index
    %c0_172 = arith.constant 0 : index
    %144 = vector.load %arg7[%c2_170, %c2_171, %c0_172] : memref<10x10x8xf32, #tpu.memory_space<vmem>>, vector<8x8x8xf32>
    %145 = vector.shape_cast %144 : vector<8x8x8xf32> to vector<64x8xf32>
    %146 = arith.truncf %145 : vector<64x8xf32> to vector<64x8xbf16>
    %c8 = arith.constant 8 : index
    %c0_173 = arith.constant 0 : index
    %c0_174 = arith.constant 0 : index
    %147 = vector.load %arg2[%c8, %c0_173, %c0_174] : memref<9x8x32xbf16, #tpu.memory_space<vmem>>, vector<1x8x32xbf16>
    %148 = vector.shape_cast %147 : vector<1x8x32xbf16> to vector<8x32xbf16>
    %cst_175 = arith.constant dense<0.000000e+00> : vector<64x32xf32>
    %149 = tpu.matmul %146, %148, %cst_175 {dimension_numbers = #tpu.dot_dimension_numbers<[1], [0], [0], [1], [0, 0, 1, 1], [], []>} : vector<64x8xbf16>, vector<8x32xbf16>, vector<64x32xf32> -> vector<64x32xf32>
    %150 = arith.addf %143, %149 : vector<64x32xf32>
    %cst_176 = arith.constant 0.00999999977 : f32
    %151 = vector.broadcast %cst_176 : f32 to vector<64x32xf32>
    %152 = arith.mulf %151, %150 : vector<64x32xf32>
    %153 = arith.maximumf %150, %152 : vector<64x32xf32>
    %cst_177 = arith.constant 0.000000e+00 : f32
    %154 = vector.broadcast %cst_177 : f32 to vector<10x10x32xf32>
    %c0_178 = arith.constant 0 : index
    %c0_179 = arith.constant 0 : index
    %c0_180 = arith.constant 0 : index
    %155 = vector.load %arg8[%c0_178, %c0_179, %c0_180] : memref<10x10x32xf32, #tpu.memory_space<vmem>>, vector<10x10x32xf32>
    tpu.vector_store %arg8[%c0_178, %c0_179, %c0_180], %154 {strides = array<i32>} : memref<10x10x32xf32, #tpu.memory_space<vmem>>, vector<10x10x32xf32>,
    %156 = vector.shape_cast %153 : vector<64x32xf32> to vector<8x8x32xf32>
    %c1_181 = arith.constant 1 : index
    %c1_182 = arith.constant 1 : index
    %c0_183 = arith.constant 0 : index
    %157 = vector.load %arg8[%c1_181, %c1_182, %c0_183] : memref<10x10x32xf32, #tpu.memory_space<vmem>>, vector<8x8x32xf32>
    tpu.vector_store %arg8[%c1_181, %c1_182, %c0_183], %156 {strides = array<i32>} : memref<10x10x32xf32, #tpu.memory_space<vmem>>, vector<8x8x32xf32>,
    %cst_184 = arith.constant 0.000000e+00 : f32
    %158 = vector.broadcast %cst_184 : f32 to vector<64x32xf32>
    %c0_185 = arith.constant 0 : index
    %c0_186 = arith.constant 0 : index
    %159 = vector.load %arg5[%c0_185, %c0_186] : memref<1x32xf32, #tpu.memory_space<vmem>>, vector<1x32xf32>
    %160 = vector.broadcast %159 : vector<1x32xf32> to vector<64x32xf32>
    %161 = arith.addf %158, %160 : vector<64x32xf32>
    %c0_187 = arith.constant 0 : index
    %c0_188 = arith.constant 0 : index
    %c0_189 = arith.constant 0 : index
    %162 = vector.load %arg8[%c0_187, %c0_188, %c0_189] : memref<10x10x32xf32, #tpu.memory_space<vmem>>, vector<8x8x32xf32>
    %163 = vector.shape_cast %162 : vector<8x8x32xf32> to vector<64x32xf32>
    %164 = arith.truncf %163 : vector<64x32xf32> to vector<64x32xbf16>
    %c0_190 = arith.constant 0 : index
    %c0_191 = arith.constant 0 : index
    %c0_192 = arith.constant 0 : index
    %165 = vector.load %arg4[%c0_190, %c0_191, %c0_192] : memref<9x32x32xbf16, #tpu.memory_space<vmem>>, vector<1x32x32xbf16>
    %166 = vector.shape_cast %165 : vector<1x32x32xbf16> to vector<32x32xbf16>
    %cst_193 = arith.constant dense<0.000000e+00> : vector<64x32xf32>
    %167 = tpu.matmul %164, %166, %cst_193 {dimension_numbers = #tpu.dot_dimension_numbers<[1], [0], [0], [1], [0, 0, 1, 1], [], []>} : vector<64x32xbf16>, vector<32x32xbf16>, vector<64x32xf32> -> vector<64x32xf32>
    %168 = arith.addf %161, %167 : vector<64x32xf32>
    %c0_194 = arith.constant 0 : index
    %c1_195 = arith.constant 1 : index
    %c0_196 = arith.constant 0 : index
    %169 = vector.load %arg8[%c0_194, %c1_195, %c0_196] : memref<10x10x32xf32, #tpu.memory_space<vmem>>, vector<8x8x32xf32>
    %170 = vector.shape_cast %169 : vector<8x8x32xf32> to vector<64x32xf32>
    %171 = arith.truncf %170 : vector<64x32xf32> to vector<64x32xbf16>
    %c1_197 = arith.constant 1 : index
    %c0_198 = arith.constant 0 : index
    %c0_199 = arith.constant 0 : index
    %172 = vector.load %arg4[%c1_197, %c0_198, %c0_199] : memref<9x32x32xbf16, #tpu.memory_space<vmem>>, vector<1x32x32xbf16>
    %173 = vector.shape_cast %172 : vector<1x32x32xbf16> to vector<32x32xbf16>
    %cst_200 = arith.constant dense<0.000000e+00> : vector<64x32xf32>
    %174 = tpu.matmul %171, %173, %cst_200 {dimension_numbers = #tpu.dot_dimension_numbers<[1], [0], [0], [1], [0, 0, 1, 1], [], []>} : vector<64x32xbf16>, vector<32x32xbf16>, vector<64x32xf32> -> vector<64x32xf32>
    %175 = arith.addf %168, %174 : vector<64x32xf32>
    %c0_201 = arith.constant 0 : index
    %c2_202 = arith.constant 2 : index
    %c0_203 = arith.constant 0 : index
    %176 = vector.load %arg8[%c0_201, %c2_202, %c0_203] : memref<10x10x32xf32, #tpu.memory_space<vmem>>, vector<8x8x32xf32>
    %177 = vector.shape_cast %176 : vector<8x8x32xf32> to vector<64x32xf32>
    %178 = arith.truncf %177 : vector<64x32xf32> to vector<64x32xbf16>
    %c2_204 = arith.constant 2 : index
    %c0_205 = arith.constant 0 : index
    %c0_206 = arith.constant 0 : index
    %179 = vector.load %arg4[%c2_204, %c0_205, %c0_206] : memref<9x32x32xbf16, #tpu.memory_space<vmem>>, vector<1x32x32xbf16>
    %180 = vector.shape_cast %179 : vector<1x32x32xbf16> to vector<32x32xbf16>
    %cst_207 = arith.constant dense<0.000000e+00> : vector<64x32xf32>
    %181 = tpu.matmul %178, %180, %cst_207 {dimension_numbers = #tpu.dot_dimension_numbers<[1], [0], [0], [1], [0, 0, 1, 1], [], []>} : vector<64x32xbf16>, vector<32x32xbf16>, vector<64x32xf32> -> vector<64x32xf32>
    %182 = arith.addf %175, %181 : vector<64x32xf32>
    %c1_208 = arith.constant 1 : index
    %c0_209 = arith.constant 0 : index
    %c0_210 = arith.constant 0 : index
    %183 = vector.load %arg8[%c1_208, %c0_209, %c0_210] : memref<10x10x32xf32, #tpu.memory_space<vmem>>, vector<8x8x32xf32>
    %184 = vector.shape_cast %183 : vector<8x8x32xf32> to vector<64x32xf32>
    %185 = arith.truncf %184 : vector<64x32xf32> to vector<64x32xbf16>
    %c3_211 = arith.constant 3 : index
    %c0_212 = arith.constant 0 : index
    %c0_213 = arith.constant 0 : index
    %186 = vector.load %arg4[%c3_211, %c0_212, %c0_213] : memref<9x32x32xbf16, #tpu.memory_space<vmem>>, vector<1x32x32xbf16>
    %187 = vector.shape_cast %186 : vector<1x32x32xbf16> to vector<32x32xbf16>
    %cst_214 = arith.constant dense<0.000000e+00> : vector<64x32xf32>
    %188 = tpu.matmul %185, %187, %cst_214 {dimension_numbers = #tpu.dot_dimension_numbers<[1], [0], [0], [1], [0, 0, 1, 1], [], []>} : vector<64x32xbf16>, vector<32x32xbf16>, vector<64x32xf32> -> vector<64x32xf32>
    %189 = arith.addf %182, %188 : vector<64x32xf32>
    %c1_215 = arith.constant 1 : index
    %c1_216 = arith.constant 1 : index
    %c0_217 = arith.constant 0 : index
    %190 = vector.load %arg8[%c1_215, %c1_216, %c0_217] : memref<10x10x32xf32, #tpu.memory_space<vmem>>, vector<8x8x32xf32>
    %191 = vector.shape_cast %190 : vector<8x8x32xf32> to vector<64x32xf32>
    %192 = arith.truncf %191 : vector<64x32xf32> to vector<64x32xbf16>
    %c4_218 = arith.constant 4 : index
    %c0_219 = arith.constant 0 : index
    %c0_220 = arith.constant 0 : index
    %193 = vector.load %arg4[%c4_218, %c0_219, %c0_220] : memref<9x32x32xbf16, #tpu.memory_space<vmem>>, vector<1x32x32xbf16>
    %194 = vector.shape_cast %193 : vector<1x32x32xbf16> to vector<32x32xbf16>
    %cst_221 = arith.constant dense<0.000000e+00> : vector<64x32xf32>
    %195 = tpu.matmul %192, %194, %cst_221 {dimension_numbers = #tpu.dot_dimension_numbers<[1], [0], [0], [1], [0, 0, 1, 1], [], []>} : vector<64x32xbf16>, vector<32x32xbf16>, vector<64x32xf32> -> vector<64x32xf32>
    %196 = arith.addf %189, %195 : vector<64x32xf32>
    %c1_222 = arith.constant 1 : index
    %c2_223 = arith.constant 2 : index
    %c0_224 = arith.constant 0 : index
    %197 = vector.load %arg8[%c1_222, %c2_223, %c0_224] : memref<10x10x32xf32, #tpu.memory_space<vmem>>, vector<8x8x32xf32>
    %198 = vector.shape_cast %197 : vector<8x8x32xf32> to vector<64x32xf32>
    %199 = arith.truncf %198 : vector<64x32xf32> to vector<64x32xbf16>
    %c5_225 = arith.constant 5 : index
    %c0_226 = arith.constant 0 : index
    %c0_227 = arith.constant 0 : index
    %200 = vector.load %arg4[%c5_225, %c0_226, %c0_227] : memref<9x32x32xbf16, #tpu.memory_space<vmem>>, vector<1x32x32xbf16>
    %201 = vector.shape_cast %200 : vector<1x32x32xbf16> to vector<32x32xbf16>
    %cst_228 = arith.constant dense<0.000000e+00> : vector<64x32xf32>
    %202 = tpu.matmul %199, %201, %cst_228 {dimension_numbers = #tpu.dot_dimension_numbers<[1], [0], [0], [1], [0, 0, 1, 1], [], []>} : vector<64x32xbf16>, vector<32x32xbf16>, vector<64x32xf32> -> vector<64x32xf32>
    %203 = arith.addf %196, %202 : vector<64x32xf32>
    %c2_229 = arith.constant 2 : index
    %c0_230 = arith.constant 0 : index
    %c0_231 = arith.constant 0 : index
    %204 = vector.load %arg8[%c2_229, %c0_230, %c0_231] : memref<10x10x32xf32, #tpu.memory_space<vmem>>, vector<8x8x32xf32>
    %205 = vector.shape_cast %204 : vector<8x8x32xf32> to vector<64x32xf32>
    %206 = arith.truncf %205 : vector<64x32xf32> to vector<64x32xbf16>
    %c6_232 = arith.constant 6 : index
    %c0_233 = arith.constant 0 : index
    %c0_234 = arith.constant 0 : index
    %207 = vector.load %arg4[%c6_232, %c0_233, %c0_234] : memref<9x32x32xbf16, #tpu.memory_space<vmem>>, vector<1x32x32xbf16>
    %208 = vector.shape_cast %207 : vector<1x32x32xbf16> to vector<32x32xbf16>
    %cst_235 = arith.constant dense<0.000000e+00> : vector<64x32xf32>
    %209 = tpu.matmul %206, %208, %cst_235 {dimension_numbers = #tpu.dot_dimension_numbers<[1], [0], [0], [1], [0, 0, 1, 1], [], []>} : vector<64x32xbf16>, vector<32x32xbf16>, vector<64x32xf32> -> vector<64x32xf32>
    %210 = arith.addf %203, %209 : vector<64x32xf32>
    %c2_236 = arith.constant 2 : index
    %c1_237 = arith.constant 1 : index
    %c0_238 = arith.constant 0 : index
    %211 = vector.load %arg8[%c2_236, %c1_237, %c0_238] : memref<10x10x32xf32, #tpu.memory_space<vmem>>, vector<8x8x32xf32>
    %212 = vector.shape_cast %211 : vector<8x8x32xf32> to vector<64x32xf32>
    %213 = arith.truncf %212 : vector<64x32xf32> to vector<64x32xbf16>
    %c7_239 = arith.constant 7 : index
    %c0_240 = arith.constant 0 : index
    %c0_241 = arith.constant 0 : index
    %214 = vector.load %arg4[%c7_239, %c0_240, %c0_241] : memref<9x32x32xbf16, #tpu.memory_space<vmem>>, vector<1x32x32xbf16>
    %215 = vector.shape_cast %214 : vector<1x32x32xbf16> to vector<32x32xbf16>
    %cst_242 = arith.constant dense<0.000000e+00> : vector<64x32xf32>
    %216 = tpu.matmul %213, %215, %cst_242 {dimension_numbers = #tpu.dot_dimension_numbers<[1], [0], [0], [1], [0, 0, 1, 1], [], []>} : vector<64x32xbf16>, vector<32x32xbf16>, vector<64x32xf32> -> vector<64x32xf32>
    %217 = arith.addf %210, %216 : vector<64x32xf32>
    %c2_243 = arith.constant 2 : index
    %c2_244 = arith.constant 2 : index
    %c0_245 = arith.constant 0 : index
    %218 = vector.load %arg8[%c2_243, %c2_244, %c0_245] : memref<10x10x32xf32, #tpu.memory_space<vmem>>, vector<8x8x32xf32>
    %219 = vector.shape_cast %218 : vector<8x8x32xf32> to vector<64x32xf32>
    %220 = arith.truncf %219 : vector<64x32xf32> to vector<64x32xbf16>
    %c8_246 = arith.constant 8 : index
    %c0_247 = arith.constant 0 : index
    %c0_248 = arith.constant 0 : index
    %221 = vector.load %arg4[%c8_246, %c0_247, %c0_248] : memref<9x32x32xbf16, #tpu.memory_space<vmem>>, vector<1x32x32xbf16>
    %222 = vector.shape_cast %221 : vector<1x32x32xbf16> to vector<32x32xbf16>
    %cst_249 = arith.constant dense<0.000000e+00> : vector<64x32xf32>
    %223 = tpu.matmul %220, %222, %cst_249 {dimension_numbers = #tpu.dot_dimension_numbers<[1], [0], [0], [1], [0, 0, 1, 1], [], []>} : vector<64x32xbf16>, vector<32x32xbf16>, vector<64x32xf32> -> vector<64x32xf32>
    %224 = arith.addf %217, %223 : vector<64x32xf32>
    %cst_250 = arith.constant 0.00999999977 : f32
    %225 = vector.broadcast %cst_250 : f32 to vector<64x32xf32>
    %226 = arith.mulf %225, %224 : vector<64x32xf32>
    %227 = arith.maximumf %224, %226 : vector<64x32xf32>
    %228 = vector.shape_cast %227 : vector<64x32xf32> to vector<8x8x32xf32>
    %c0_251 = arith.constant 0 : index
    %c0_252 = arith.constant 0 : index
    %c0_253 = arith.constant 0 : index
    %c0_254 = arith.constant 0 : index
    %229 = vector.load %arg6[%c0_251, %c0_252, %c0_253, %c0_254] : memref<1x8x8x32xf32, #tpu.memory_space<vmem>>, vector<1x8x8x32xf32>
    %230 = vector.shape_cast %229 : vector<1x8x8x32xf32> to vector<8x8x32xf32>
    %231 = vector.shape_cast %228 : vector<8x8x32xf32> to vector<1x8x8x32xf32>
    tpu.vector_store %arg6[%c0_251, %c0_252, %c0_253, %c0_254], %231 {strides = array<i32>} : memref<1x8x8x32xf32, #tpu.memory_space<vmem>>, vector<1x8x8x32xf32>,
    return
  }
  func.func @transform_0(%arg0: i32) -> (i32, i32, i32, i32, i32, i32) {
    %c0_i32 = arith.constant 0 : i32
    %c0_i32_0 = arith.constant 0 : i32
    %c0_i32_1 = arith.constant 0 : i32
    %c0_i32_2 = arith.constant 0 : i32
    %c0_i32_3 = arith.constant 0 : i32
    %c0_i32_4 = arith.constant 0 : i32
    return %arg0, %c0_i32, %c0_i32_0, %c0_i32_1, %c0_i32_2, %c0_i32_3 : i32, i32, i32, i32, i32, i32
  }
  func.func @transform_1(%arg0: i32) -> (i32, i32, i32) {
    %c0_i32 = arith.constant 0 : i32
    %c0_i32_0 = arith.constant 0 : i32
    %c0_i32_1 = arith.constant 0 : i32
    %c0_i32_2 = arith.constant 0 : i32
    return %c0_i32, %c0_i32_0, %c0_i32_1 : i32, i32, i32
  }
  func.func @transform_2(%arg0: i32) -> (i32, i32) {
    %c0_i32 = arith.constant 0 : i32
    %c0_i32_0 = arith.constant 0 : i32
    %c0_i32_1 = arith.constant 0 : i32
    return %c0_i32, %c0_i32_0 : i32, i32
  }
  func.func @transform_3(%arg0: i32) -> (i32, i32, i32) {
    %c0_i32 = arith.constant 0 : i32
    %c0_i32_0 = arith.constant 0 : i32
    %c0_i32_1 = arith.constant 0 : i32
    %c0_i32_2 = arith.constant 0 : i32
    return %c0_i32, %c0_i32_0, %c0_i32_1 : i32, i32, i32
  }
  func.func @transform_4(%arg0: i32) -> (i32, i32) {
    %c0_i32 = arith.constant 0 : i32
    %c0_i32_0 = arith.constant 0 : i32
    %c0_i32_1 = arith.constant 0 : i32
    return %c0_i32, %c0_i32_0 : i32, i32
  }
  func.func @transform_5(%arg0: i32) -> (i32, i32, i32, i32) {
    %c0_i32 = arith.constant 0 : i32
    %c0_i32_0 = arith.constant 0 : i32
    %c0_i32_1 = arith.constant 0 : i32
    %c0_i32_2 = arith.constant 0 : i32
    return %arg0, %c0_i32, %c0_i32_0, %c0_i32_1 : i32, i32, i32, i32
  }
}

</mosaic_0001>

<bundles_post_ra>
// kernel: downlayer_forward.1
= control target key start
LH: loop header
LB: loop body
LE: loop exit
PB: predicated region body
PF: predicated region fallthrough
CT: control target
= control target key end

     0   :  { %10 = vsyncpa [#allocation5], 0  ;;  %s4310_s0 = inlined_call_operand.vmem [shape: f32[2,2,2,9,9,8], index: 0, kind: input, shape index: {}]   ;;  %s4311_s1 = inlined_call_operand.vmem [shape: bf16[9,8,32], index: 1, kind: input, shape index: {}]   ;;  %s4312_s2 = inlined_call_operand.vmem [shape: f32[1,32], index: 2, kind: input, shape index: {}]   ;;  %s4313_s3 = inlined_call_operand.vmem [shape: bf16[9,32,32], index: 3, kind: input, shape index: {}]   ;;  %s4314_s4 = inlined_call_operand.vmem [shape: f32[1,32], index: 4, kind: input, shape index: {}]   ;;  %s4315_s5 = inlined_call_operand.hbm [shape: f32[2,8,8,32], index: 5, kind: output, shape index: {}]  }
   0x1   :  { %12 = vsyncpa [#allocation5 + $0x1], 0  ;;  %s3619_s18 = smov 0   ;;  %s3621_s19 = smov 0  }
   0x2   :  { %s3623_s20 = smov 0   ;;  %s3625_s21 = smov 0  }
   0x3 LB: > { %s3640_s22 = sadd.s32 4294967295, %s3583_s21   ;;  %s2754_s23 = sadd.s32 4294967294, %s3583_s21   ;;  %s3583_s21 = sphi %s3625_s21, %s4321_s21   ;;  %s3579_s20 = sphi %s3623_s20, %s4320_s20   ;;  %s3575_s19 = sphi %s3621_s19, %s4319_s19   ;;  %s3571_s18 = sphi %s3619_s18, %s4318_s18  }
   0x4   : > { %s3644_s24 = sadd.s32 1, %s3583_s21   ;;  %s135_s25 = sadd.s32 1, %s3579_s20 }
   0x5   : > { %s132_s26 = ssub.s32 %s3583_s21, %s3644_s24  ;;  %p145_p0 = scmp.ne.s32.totalorder %s3579_s20, %s3575_s19 }
   0x6   : > { %p133_p1 = scmp.eq.s32.totalorder %s132_s26, 0  ;;  %p146_p2 = scmp.eq.s32.totalorder %s3640_s22, 1 }
   0x7   : > { %p151_p3 = scmp.ne.s32.totalorder %s3575_s19, %s3571_s18  ;;  %p152_p4 = scmp.eq.s32.totalorder %s2754_s23, 1 }
   0x8   : > { %s3655_s27 = scalar_select %p133_p1, %s3579_s20, %s135_s25  }
   0x9   : > { %p3657_p5 = por %p146_p2, %p145_p0  ;;  %p3661_p6 = por %p152_p4, %p151_p3 }
   0xa   : > { %p2757_p7 = scmp.ge.s32.totalorder %s3583_s21, 1  ;;  %p190_p8 = scmp.lt.s32.totalorder %s3583_s21, 3 }
   0xc   : > { %p191_p9 = pnand %p2757_p7, %p190_p8 }
   0xd   : > { %v666_v0 = vld [vmem:[%s4311_s1] sm:$0xf] (!%p191_p9)  ;;  %vm679_vm0 = vcmask (!%p191_p9), 1043456   ;;  %p218_p10 = scmp.lt.s32.totalorder (!%p191_p9), %s3640_s22, 1  ;;  %vm615_vm1 = vcmask (!%p191_p9), 64512   ;;  %v3585_v2 = vmov (!%p191_p9), 0.0  }
   0xe   : > { %194 = sbr.rel (%p191_p9) target bundleno = 828 (0x33c), region = 40  ;;  %3451 = vmatprep.subr.msk.bf16.mxu0 (!%p191_p9), %vm679_vm0, %v666_v0  ;;  %v681_v1 = vsel (!%p191_p9), %vm679_vm0, %v666_v0, 0  ;;  %616 = vst.msk [vmem:[#allocation2] sm:$0xff] (!%p191_p9), %vm615_vm1, %v3585_v2  ;;  %vm617_vm2 = vcmask (!%p191_p9), 58368   ;;  %619 = vst.msk [vmem:[#allocation2 + $0x10] sm:$0xff] (!%p191_p9), %vm615_vm1, %v3585_v2  ;;  %vm1589_vm3 = vcmask (!%p191_p9), 261120  }
   0xf   : > { %621 = vst.msk [vmem:[#allocation2 + $0x20] sm:$0xff] (!%p191_p9), %vm615_vm1, %v3585_v2  ;;  %623 = vst.msk [vmem:[#allocation2 + $0x30] sm:$0xff] (!%p191_p9), %vm615_vm1, %v3585_v2  ;;  %v3696_v3 = vld [vmem:[%s4311_s1 + $0x4] sm:$0xf] (!%p191_p9)  ;;  %3110 = vmatpush3.bf16.msra.mxu0 (!%p191_p9), %v681_v1  ;;  %vm1591_vm4 = vcmask (!%p191_p9), 254976   ;;  %s215_s23 = sand.u32 (!%p191_p9), 1, %s3575_s19  }
  0x10   : > { %625 = vst.msk [vmem:[#allocation2 + $0x40] sm:$0xff] (!%p191_p9), %vm615_vm1, %v3585_v2  ;;  %627 = vst.msk [vmem:[#allocation2 + $0x50] sm:$0xff] (!%p191_p9), %vm615_vm1, %v3585_v2  ;;  %3452 = vmatprep.subr.msk.bf16.mxu0 (!%p191_p9), %vm679_vm0, %v3696_v3  ;;  %s2758_s30 = sshll.u32 (!%p191_p9), %s215_s23, 6  ;;  %s3009_s7 = sshll.u32 (!%p191_p9), %s3640_s22, 10 }
  0x11   : > { %629 = vst.msk [vmem:[#allocation2 + $0x60] sm:$0xff] (!%p191_p9), %vm615_vm1, %v3585_v2  ;;  %631 = vst.msk [vmem:[#allocation2 + $0x70] sm:$0xff] (!%p191_p9), %vm615_vm1, %v3585_v2  ;;  %s217_s6 = scalar_lea.vmem (!%p191_p9), [#allocation4], %s2758_s30  ;;  %s4260_s11 = scalar_lea.hbm (!%p191_p9), %s4315_s5, %s3009_s7 }
  0x12   : > { %633 = vst.msk [vmem:[#allocation2 + $0x80] sm:$0xff] (!%p191_p9), %vm615_vm1, %v3585_v2  ;;  %635 = vst.msk [vmem:[#allocation2 + $0x90] sm:$0xff] (!%p191_p9), %vm615_vm1, %v3585_v2  ;;  %s2692_s8 = sshll.u32 (!%p191_p9), %s217_s6, 4  ;;  %s4262_s8 = int_to_ptr.vmem [resolvable:$true] %s2692_s8 }
  0x13   : > { %620 = vst.msk [vmem:[#allocation2 + $0x18] sm:$0x3] (!%p191_p9), %vm617_vm2, %v3585_v2  ;;  %618 = vst.msk [vmem:[#allocation2 + $0x8] sm:$0x3] (!%p191_p9), %vm617_vm2, %v3585_v2  ;;  %s3521_s12 = scalar_lea.vmem (!%p191_p9), %s4262_s8, 1024 }
  0x14   : > { %622 = vst.msk [vmem:[#allocation2 + $0x28] sm:$0x3] (!%p191_p9), %vm617_vm2, %v3585_v2  ;;  %624 = vst.msk [vmem:[#allocation2 + $0x38] sm:$0x3] (!%p191_p9), %vm617_vm2, %v3585_v2  ;;  %p3522_p11 = scmp.ne.s32.totalorder (!%p191_p9), %s4262_s8, %s3521_s12 }
  0x15   : > { %s219_s9 = scalar_select %p218_p10, %s3640_s22, 1  ;;  %626 = vst.msk [vmem:[#allocation2 + $0x48] sm:$0x3] %vm617_vm2, %v3585_v2  ;;  %628 = vst.msk [vmem:[#allocation2 + $0x58] sm:$0x3] %vm617_vm2, %v3585_v2 }
  0x16   : > { %630 = vst.msk [vmem:[#allocation2 + $0x68] sm:$0x3] %vm617_vm2, %v3585_v2  ;;  %632 = vst.msk [vmem:[#allocation2 + $0x78] sm:$0x3] %vm617_vm2, %v3585_v2  ;;  %s4269_s22 = scalar_lea.sflag [#allocation5], %s215_s23  ;;  %p3523_p12 = pnand %p3522_p11, %p3657_p5 }
  0x17   : > { %634 = vst.msk [vmem:[#allocation2 + $0x88] sm:$0x3] %vm617_vm2, %v3585_v2  ;;  %636 = vst.msk [vmem:[#allocation2 + $0x98] sm:$0x3] %vm617_vm2, %v3585_v2  ;;  %s3460_s10 = smul.u32 576, %s219_s9 }
  0x18   : > { %1597 = vst.msk [vmem:[#allocation3 + $0x30] sm:$0xff] %vm1589_vm3, %v3585_v2  ;;  %1590 = vst.msk [vmem:[#allocation3] sm:$0xff] %vm1589_vm3, %v3585_v2  ;;  %p3524_p13 = pneg %p3523_p12 }
  0x19   : > { %s3726_s13 = scalar_lea.vmem %s4310_s0, %s3460_s10  ;;  %1598 = vst.msk [vmem:[#allocation3 + $0x38] sm:$0x3] %vm1591_vm4, %v3585_v2  ;;  %1592 = vst.msk [vmem:[#allocation3 + $0x8] sm:$0x3] %vm1591_vm4, %v3585_v2 }
  0x1a   : > { %v224_v4 = vld [vmem:[%s3726_s13] sm:$0xff]  ;;  %v2760_v5 = vld [vmem:[%s3726_s13 + $0x90] sm:$0xff]  ;;  %1593 = vst.msk [vmem:[#allocation3 + $0x10] sm:$0xff] %vm1589_vm3, %v3585_v2  ;;  %1595 = vst.msk [vmem:[#allocation3 + $0x20] sm:$0xff] %vm1589_vm3, %v3585_v2 }
  0x1b   : > { %v273_v6 = vld [vmem:[%s3726_s13 + $0x1] sm:$0xff]  ;;  %v232_v7 = vmul.f32 0.015625, %v224_v4  ;;  %v257_v8 = vmul.f32 0.046875, %v2760_v5  ;;  %v2768_v10 = vld [vmem:[%s3726_s13 + $0x91] sm:$0xff]  ;;  %1594 = vst.msk [vmem:[#allocation3 + $0x18] sm:$0x3] %vm1591_vm4, %v3585_v2 }
  0x1c   : > { %v281_v9 = vmul.f32 0.046875, %v273_v6  ;;  %v2776_v11 = vld [vmem:[%s3726_s13 + $0x120] sm:$0xff]  ;;  %v2784_v12 = vld [vmem:[%s3726_s13 + $0x1b0] sm:$0xff]  ;;  %v305_v16 = vmul.f32 0.015625, %v2768_v10  ;;  %1596 = vst.msk [vmem:[#allocation3 + $0x28] sm:$0x3] %vm1591_vm4, %v3585_v2 }
  0x1d   : > { %v2792_v13 = vld [vmem:[%s3726_s13 + $0x121] sm:$0xff]  ;;  %v2800_v14 = vld [vmem:[%s3726_s13 + $0x1b1] sm:$0xff]  ;;  %v265_v15 = vadd.f32 %v257_v8, %v232_v7  ;;  %v330_v19 = vmul.f32 0.046875, %v2776_v11  ;;  %v355_v20 = vmul.f32 0.140625, %v2784_v12  ;;  %1599 = vst.msk [vmem:[#allocation3 + $0x40] sm:$0xff] %vm1589_vm3, %v3585_v2  ;;  %1601 = vst.msk [vmem:[#allocation3 + $0x50] sm:$0xff] %vm1589_vm3, %v3585_v2 }
  0x1e   : > { %v2808_v17 = vld [vmem:[%s3726_s13 + $0x10] sm:$0xff]  ;;  %v2816_v18 = vld [vmem:[%s3726_s13 + $0xa0] sm:$0xff]  ;;  %v379_v23 = vmul.f32 0.140625, %v2792_v13  ;;  %v403_v24 = vmul.f32 0.046875, %v2800_v14  ;;  %1600 = vst.msk [vmem:[#allocation3 + $0x48] sm:$0x3] %vm1591_vm4, %v3585_v2 }
  0x1f   : > { %v2824_v21 = vld [vmem:[%s3726_s13 + $0x11] sm:$0xff]  ;;  %v289_v22 = vadd.f32 %v281_v9, %v265_v15  ;;  %v3739_v25 = vmul.f32 0.046875, %v2808_v17  ;;  %v2832_v26 = vld [vmem:[%s3726_s13 + $0xa1] sm:$0xff]  ;;  %v3743_v28 = vmul.f32 0.140625, %v2816_v18  ;;  %v233_v29 = vmul.f32 0.015625, %v2808_v17  ;;  %1603 = vst.msk [vmem:[#allocation3 + $0x60] sm:$0xff] %vm1589_vm3, %v3585_v2 }
  0x20   : > { %v226_v27 = vld [vmem:[%s3726_s13 + $0x20] sm:$0xff]  ;;  %v2762_v31 = vld [vmem:[%s3726_s13 + $0xb0] sm:$0xff]  ;;  %v258_v32 = vmul.f32 0.046875, %v2816_v18  ;;  %v282_v37 = vmul.f32 0.046875, %v2824_v21  ;;  %v3749_v40 = vmul.f32 0.140625, %v2824_v21  ;;  %v3751_v41 = vmul.f32 0.046875, %v2832_v26 }
  0x21   : > { %v234_v30 = vmul.f32 0.015625, %v226_v27  ;;  %v275_v33 = vld [vmem:[%s3726_s13 + $0x21] sm:$0xff]  ;;  %v313_v34 = vadd.f32 %v305_v16, %v289_v22  ;;  %v2840_v35 = vld [vmem:[%s3726_s13 + $0x130] sm:$0xff]  ;;  %v259_v36 = vmul.f32 0.046875, %v2762_v31  ;;  %v306_v43 = vmul.f32 0.015625, %v2832_v26  ;;  %1605 = vst.msk [vmem:[#allocation3 + $0x70] sm:$0xff] %vm1589_vm3, %v3585_v2 }
  0x22   : > { %v283_v38 = vmul.f32 0.046875, %v275_v33  ;;  %v2770_v39 = vld [vmem:[%s3726_s13 + $0xb1] sm:$0xff]  ;;  %v266_v42 = vadd.f32 %v258_v32, %v233_v29  ;;  %v2778_v44 = vld [vmem:[%s3726_s13 + $0x140] sm:$0xff]  ;;  %v3754_v46 = vmul.f32 0.015625, %v2840_v35  ;;  %v331_v56 = vmul.f32 0.046875, %v2840_v35  ;;  %1607 = vst.msk [vmem:[#allocation3 + $0x80] sm:$0xff] %vm1589_vm3, %v3585_v2 }
  0x23   : > { %v338_v45 = vadd.f32 %v330_v19, %v313_v34  ;;  %v2848_v47 = vld [vmem:[%s3726_s13 + $0x1c0] sm:$0xff]  ;;  %v2856_v48 = vld [vmem:[%s3726_s13 + $0x131] sm:$0xff]  ;;  %v267_v49 = vadd.f32 %v259_v36, %v234_v30  ;;  %v307_v50 = vmul.f32 0.015625, %v2770_v39  ;;  %v332_v61 = vmul.f32 0.046875, %v2778_v44  ;;  %1602 = vst.msk [vmem:[#allocation3 + $0x58] sm:$0x3] %vm1591_vm4, %v3585_v2 }
  0x24   : > { %v3759_v51 = vld [vmem:[%s3726_s13 + $0x1d0] sm:$0xff]  ;;  %v3761_v52 = vmul.f32 0.046875, %v2848_v47  ;;  %v3763_v53 = vmul.f32 0.046875, %v2856_v48  ;;  %v2864_v54 = vld [vmem:[%s3726_s13 + $0x1c1] sm:$0xff]  ;;  %v290_v55 = vadd.f32 %v282_v37, %v266_v42  ;;  %v356_v0 = vmul.f32 0.140625, %v2848_v47  ;;  %1609 = vst.msk [vmem:[#allocation3 + $0x90] sm:$0xff] %vm1589_vm3, %v3585_v2 }
  0x25   : > { %v3767_v57 = vld [vmem:[%s3726_s13 + $0x141] sm:$0xff]  ;;  %v363_v58 = vadd.f32 %v355_v20, %v338_v45  ;;  %v3769_v59 = vmul.f32 0.015625, %v2864_v54  ;;  %v291_v60 = vadd.f32 %v283_v38, %v267_v49  ;;  %v3772_v62 = vld [vmem:[%s3726_s13 + $0x1d1] sm:$0xff]  ;;  %v357_v1 = vmul.f32 0.140625, %v3759_v51  ;;  %1604 = vst.msk [vmem:[#allocation3 + $0x68] sm:$0x3] %vm1591_vm4, %v3585_v2 }
  0x26   : > { %v314_v63 = vadd.f32 %v306_v43, %v290_v55  ;;  %v380_v4 = vmul.f32 0.140625, %v2856_v48  ;;  %v381_v7 = vmul.f32 0.140625, %v3767_v57  ;;  %v404_v8 = vmul.f32 0.046875, %v2864_v54  ;;  %v2810_v9 = vld [vmem:[%s3726_s13 + $0x30] sm:$0xff]  ;;  %v2818_v14 = vld [vmem:[%s3726_s13 + $0xc0] sm:$0xff] }
  0x27   : > { %v387_v5 = vadd.f32 %v379_v23, %v363_v58  ;;  %v315_v6 = vadd.f32 %v307_v50, %v291_v60  ;;  %v405_v11 = vmul.f32 0.046875, %v3772_v62  ;;  %v429_v12 = vmul.f32 0.046875, %v226_v27  ;;  %v2826_v19 = vld [vmem:[%s3726_s13 + $0x31] sm:$0xff]  ;;  %v3781_v20 = vld [vmem:[%s3726_s13 + $0x40] sm:$0xff]  ;;  %1606 = vst.msk [vmem:[#allocation3 + $0x78] sm:$0x3] %vm1591_vm4, %v3585_v2 }
  0x28   : > { %v339_v10 = vadd.f32 %v331_v56, %v314_v63  ;;  %v430_v13 = vmul.f32 0.046875, %v2810_v9  ;;  %v454_v17 = vmul.f32 0.140625, %v2762_v31  ;;  %v455_v18 = vmul.f32 0.140625, %v2818_v14  ;;  %v2834_v26 = vld [vmem:[%s3726_s13 + $0xc1] sm:$0xff]  ;;  %v3785_v30 = vld [vmem:[%s3726_s13 + $0xd0] sm:$0xff] }
  0x29   : > { %v411_v15 = vadd.f32 %v403_v24, %v387_v5  ;;  %v340_v16 = vadd.f32 %v332_v61, %v315_v6  ;;  %v478_v22 = vmul.f32 0.140625, %v275_v33  ;;  %v479_v23 = vmul.f32 0.140625, %v2826_v19  ;;  %v2842_v34 = vld [vmem:[%s3726_s13 + $0x150] sm:$0xff]  ;;  %v3790_v31 = vld [vmem:[%s3726_s13 + $0x41] sm:$0xff]  ;;  %1608 = vst.msk [vmem:[#allocation3 + $0x88] sm:$0x3] %vm1591_vm4, %v3585_v2 }
  0x2a   : > { %v364_v21 = vadd.f32 %v356_v0, %v339_v10  ;;  %v502_v29 = vmul.f32 0.046875, %v2770_v39  ;;  %v503_v24 = vmul.f32 0.046875, %v2834_v26  ;;  %v527_v35 = vmul.f32 0.015625, %v2778_v44  ;;  %v3799_v47 = vld [vmem:[%s3726_s13 + $0x160] sm:$0xff]  ;;  %v3805_v60 = vld [vmem:[%s3726_s13 + $0x1f0] sm:$0xff] }
  0x2b   : > { %v436_v27 = vadd.f32 %v3739_v25, %v411_v15  ;;  %v365_v32 = vadd.f32 %v357_v1, %v340_v16  ;;  %v528_v37 = vmul.f32 0.015625, %v2842_v34  ;;  %v235_v38 = vmul.f32 0.015625, %v2810_v9  ;;  %v3796_v25 = vld [vmem:[%s3726_s13 + $0xd1] sm:$0xff]  ;;  %v2850_v56 = vld [vmem:[%s3726_s13 + $0x1e0] sm:$0xff]  ;;  %1610 = vst.msk [vmem:[#allocation3 + $0x98] sm:$0x3] %vm1591_vm4, %v3585_v2 }
  0x2c   : > { %v388_v36 = vadd.f32 %v380_v4, %v364_v21  ;;  %v236_v33 = vmul.f32 0.015625, %v3781_v20  ;;  %v260_v43 = vmul.f32 0.046875, %v2818_v14  ;;  %v261_v45 = vmul.f32 0.046875, %v3785_v30  ;;  %v2858_v6 = vld [vmem:[%s3726_s13 + $0x151] sm:$0xff]  ;;  %v2866_v16 = vld [vmem:[%s3726_s13 + $0x1e1] sm:$0xff] }
  0x2d   : > { %v461_v39 = vadd.f32 %v3743_v28, %v436_v27  ;;  %v389_v42 = vadd.f32 %v381_v7, %v365_v32  ;;  %v284_v48 = vmul.f32 0.046875, %v2826_v19  ;;  %v285_v49 = vmul.f32 0.046875, %v3790_v31  ;;  %v2872_v2 = vld [vmem:[%s4312_s2] ss:$0 sm:$0xff] }
  0x2e   : > { %v412_v44 = vadd.f32 %v404_v8, %v388_v36  ;;  %v308_v50 = vmul.f32 0.015625, %v2834_v26  ;;  %v268_v28 = vadd.f32 %v260_v43, %v235_v38  ;;  %v269_v58 = vadd.f32 %v261_v45, %v236_v33  ;;  %v3812_v8 = vld [vmem:[%s3726_s13 + $0x161] sm:$0xff] }
  0x2f   : > { %v485_v54 = vadd.f32 %v3749_v40, %v461_v39  ;;  %v413_v55 = vadd.f32 %v405_v11, %v389_v42  ;;  %v309_v63 = vmul.f32 0.015625, %v3796_v25  ;;  %v333_v0 = vmul.f32 0.046875, %v2842_v34  ;;  %v2812_v39 = vld [vmem:[%s3726_s13 + $0x50] sm:$0xff] }
  0x30   : > { %v437_v61 = vadd.f32 %v429_v12, %v412_v44  ;;  %v334_v1 = vmul.f32 0.046875, %v3799_v47  ;;  %v292_v7 = vadd.f32 %v284_v48, %v268_v28  ;;  %v293_v40 = vadd.f32 %v285_v49, %v269_v58 }
  0x31   : > { %v509_v4 = vadd.f32 %v3751_v41, %v485_v54  ;;  %v438_v5 = vadd.f32 %v430_v13, %v413_v55  ;;  %v552_v10 = vmul.f32 0.046875, %v3759_v51  ;;  %v358_v11 = vmul.f32 0.140625, %v2850_v56  ;;  %v3819_v41 = vld [vmem:[%s3726_s13 + $0x1f1] sm:$0xff]  ;;  %v2820_v55 = vld [vmem:[%s3726_s13 + $0xe0] sm:$0xff] }
  0x32   : > { %v462_v9 = vadd.f32 %v454_v17, %v437_v61  ;;  %v359_v12 = vmul.f32 0.140625, %v3805_v60  ;;  %v316_v19 = vadd.f32 %v308_v50, %v292_v7  ;;  %v317_v21 = vadd.f32 %v309_v63, %v293_v40  ;;  %v3844_v7 = vld [vmem:[%s3726_s13 + $0x61] sm:$0xff] }
  0x33   : > { %v534_v14 = vadd.f32 %v3754_v46, %v509_v4  ;;  %v463_v15 = vadd.f32 %v455_v18, %v438_v5  ;;  %v553_v26 = vmul.f32 0.046875, %v2850_v56  ;;  %v382_v27 = vmul.f32 0.140625, %v2858_v6  ;;  %v654_v40 = vld [vmem:[#allocation2] sm:$0xff] }
  0x34   : > { %v486_v13 = vadd.f32 %v478_v22, %v462_v9  ;;  %v383_v32 = vmul.f32 0.140625, %v3812_v8  ;;  %v341_v34 = vadd.f32 %v333_v0, %v316_v19  ;;  %v342_v36 = vadd.f32 %v334_v1, %v317_v21  ;;  %v3840_v1 = vld [vmem:[%s3726_s13 + $0xf0] sm:$0xff] }
  0x35   : > { %v559_v17 = vadd.f32 %v3761_v52, %v534_v14  ;;  %v487_v51 = vadd.f32 %v479_v23, %v463_v15  ;;  %v576_v46 = vmul.f32 0.046875, %v3767_v57  ;;  %v406_v18 = vmul.f32 0.046875, %v2866_v16  ;;  %v3849_v14 = vld [vmem:[%s3726_s13 + $0xf1] sm:$0xff] }
  0x36   : > { %v510_v38 = vadd.f32 %v502_v29, %v486_v13  ;;  %v407_v33 = vmul.f32 0.046875, %v3819_v41  ;;  %v366_v43 = vadd.f32 %v358_v11, %v341_v34  ;;  %v367_v45 = vadd.f32 %v359_v12, %v342_v36  ;;  %v2844_v11 = vld [vmem:[%s3726_s13 + $0x170] sm:$0xff]  ;;  %v3853_v13 = vld [vmem:[%s3726_s13 + $0x180] sm:$0xff] }
  0x37   : > { %v583_v42 = vadd.f32 %v3763_v53, %v559_v17  ;;  %v511_v22 = vadd.f32 %v503_v24, %v487_v51  ;;  %v577_v48 = vmul.f32 0.046875, %v2858_v6  ;;  %v431_v52 = vmul.f32 0.046875, %v3781_v20 }
  0x38   : > { %v535_v44 = vadd.f32 %v527_v35, %v510_v38  ;;  %v432_v23 = vmul.f32 0.046875, %v2812_v39  ;;  %v390_v49 = vadd.f32 %v382_v27, %v366_v43  ;;  %v391_v50 = vadd.f32 %v383_v32, %v367_v45  ;;  %v2852_v38 = vld [vmem:[%s3726_s13 + $0x200] sm:$0xff] }
  0x39   : > { %v607_v29 = vadd.f32 %v3769_v59, %v583_v42  ;;  %v536_v57 = vadd.f32 %v528_v37, %v511_v22  ;;  %v600_v53 = vmul.f32 0.015625, %v3772_v62  ;;  %v601_v24 = vmul.f32 0.015625, %v2866_v16  ;;  %v2828_v59 = vld [vmem:[%s3726_s13 + $0x51] sm:$0xff]  ;;  %v2836_v37 = vld [vmem:[%s3726_s13 + $0xe1] sm:$0xff] }
  0x3a   : > { %v560_v54 = vadd.f32 %v552_v10, %v535_v44  ;;  %v456_v35 = vmul.f32 0.140625, %v3785_v30  ;;  %v414_v56 = vadd.f32 %v406_v18, %v390_v49  ;;  %v415_v28 = vadd.f32 %v407_v33, %v391_v50  ;;  %v3837_v62 = vld [vmem:[%s3726_s13 + $0x60] sm:$0xff] }
  0x3b   : > { %638 = vst.msk [vmem:[#allocation2 + $0x11] sm:$0xff] %vm615_vm1, %v607_v29  ;;  %v561_v20 = vadd.f32 %v553_v26, %v536_v57  ;;  %v457_v58 = vmul.f32 0.140625, %v2820_v55  ;;  %v480_v63 = vmul.f32 0.140625, %v3790_v31  ;;  %v481_v0 = vmul.f32 0.140625, %v2828_v59 }
  0x3c   : > { %v584_v61 = vadd.f32 %v576_v46, %v560_v54  ;;  %v439_v4 = vadd.f32 %v431_v52, %v414_v56  ;;  %v440_v5 = vadd.f32 %v432_v23, %v415_v28  ;;  %v504_v6 = vmul.f32 0.046875, %v3796_v25  ;;  %v2860_v46 = vld [vmem:[%s3726_s13 + $0x171] sm:$0xff] }
  0x3d   : > { %v585_v30 = vadd.f32 %v577_v48, %v561_v20  ;;  %v505_v10 = vmul.f32 0.046875, %v2836_v37  ;;  %v529_v12 = vmul.f32 0.015625, %v3799_v47  ;;  %v237_v31 = vmul.f32 0.015625, %v2812_v39  ;;  %v3867_v48 = vld [vmem:[%s3726_s13 + $0x210] sm:$0xff] }
  0x3e   : > { %v608_v9 = vadd.f32 %v600_v53, %v584_v61  ;;  %v464_v16 = vadd.f32 %v456_v35, %v439_v4  ;;  %v465_v19 = vadd.f32 %v457_v58, %v440_v5  ;;  %v238_v21 = vmul.f32 0.015625, %v3837_v62  ;;  %v3873_v53 = vld [vmem:[%s3726_s13 + $0x181] sm:$0xff] }
  0x3f   : > { %v609_v15 = vadd.f32 %v601_v24, %v585_v30  ;;  %v262_v25 = vmul.f32 0.046875, %v2820_v55  ;;  %v263_v26 = vmul.f32 0.046875, %v3840_v1  ;;  %v286_v27 = vmul.f32 0.046875, %v2828_v59  ;;  %v2868_v24 = vld [vmem:[%s3726_s13 + $0x201] sm:$0xff] }
  0x40   : > { %639 = vst.msk [vmem:[#allocation2 + $0x21] sm:$0xff] %vm615_vm1, %v608_v9  ;;  %v287_v47 = vmul.f32 0.046875, %v3844_v7  ;;  %v488_v32 = vadd.f32 %v480_v63, %v464_v16  ;;  %v489_v17 = vadd.f32 %v481_v0, %v465_v19  ;;  %v530_v51 = vmul.f32 0.015625, %v2844_v11  ;;  %v3881_v63 = vld [vmem:[%s3726_s13 + $0x211] sm:$0xff]  ;;  %v3897_v16 = vld [vmem:[%s4311_s1 + $0x8] sm:$0xf] }
  0x41   : > { %640 = vst.msk [vmem:[#allocation2 + $0x31] sm:$0xff] %vm615_vm1, %v609_v15  ;;  %v554_v34 = vmul.f32 0.046875, %v3805_v60  ;;  %v270_v18 = vadd.f32 %v262_v25, %v237_v31  ;;  %v271_v33 = vadd.f32 %v263_v26, %v238_v21  ;;  %v310_v39 = vmul.f32 0.015625, %v2836_v37 }
  0x42   : > { %v3860_v36 = vld [vmem:[#allocation2 + $0x10] sm:$0xff]  ;;  %v311_v42 = vmul.f32 0.015625, %v3849_v14  ;;  %v512_v43 = vadd.f32 %v504_v6, %v488_v32  ;;  %v513_v45 = vadd.f32 %v505_v10, %v489_v17  ;;  %v555_v44 = vmul.f32 0.046875, %v2852_v38 }
  0x43   : > { %v662_v22 = vpack.c.bf16 %v3860_v36, %v654_v40  ;;  %v294_v52 = vadd.f32 %v286_v27, %v270_v18  ;;  %v295_v60 = vadd.f32 %v287_v47, %v271_v33  ;;  %v335_v23 = vmul.f32 0.046875, %v2844_v11  ;;  %v2814_v10 = vld [vmem:[%s3726_s13 + $0x70] sm:$0xff] }
  0x44   : > { %v336_v29 = vmul.f32 0.046875, %v3853_v13  ;;  %v537_v57 = vadd.f32 %v529_v12, %v512_v43  ;;  %v538_v49 = vadd.f32 %v530_v51, %v513_v45  ;;  %v578_v50 = vmul.f32 0.046875, %v3812_v8  ;;  %v2830_v32 = vld [vmem:[%s3726_s13 + $0x71] sm:$0xff] }
  0x45   : > { %3111 = vmatprep.mubr.msk.bf16.mxu0 %vm615_vm1, %v662_v22  ;;  %v579_v54 = vmul.f32 0.046875, %v2860_v46  ;;  %v318_v55 = vadd.f32 %v310_v39, %v294_v52  ;;  %v319_v35 = vadd.f32 %v311_v42, %v295_v60  ;;  %v360_v20 = vmul.f32 0.140625, %v2852_v38  ;;  %v2846_v52 = vld [vmem:[%s3726_s13 + $0x190] sm:$0xff] }
  0x46   : > { %v361_v56 = vmul.f32 0.140625, %v3867_v48  ;;  %v562_v58 = vadd.f32 %v554_v34, %v537_v57  ;;  %v563_v59 = vadd.f32 %v555_v44, %v538_v49  ;;  %v602_v37 = vmul.f32 0.015625, %v3819_v41  ;;  %v2854_v57 = vld [vmem:[%s3726_s13 + $0x220] sm:$0xff] }
  0x47   : > { %v3877_v28 = vld [vmem:[#allocation2 + $0x20] sm:$0xff]  ;;  %v603_v61 = vmul.f32 0.015625, %v2868_v24  ;;  %v343_v0 = vadd.f32 %v335_v23, %v318_v55  ;;  %v344_v30 = vadd.f32 %v336_v29, %v319_v35  ;;  %v384_v4 = vmul.f32 0.140625, %v2860_v46 }
  0x48   : > { %v3883_v8 = vld [vmem:[#allocation2 + $0x30] sm:$0xff]  ;;  %v385_v5 = vmul.f32 0.140625, %v3873_v53  ;;  %v783_v40 = vsel %vm679_vm0, %v3696_v3, 0  ;;  %v586_v9 = vadd.f32 %v578_v50, %v562_v58  ;;  %v587_v41 = vadd.f32 %v579_v54, %v563_v59  ;;  %v2822_v3 = vld [vmem:[%s3726_s13 + $0x100] sm:$0xff] }
  0x49   : > { %v3888_v6 = vpack.c.bf16 %v3883_v8, %v3877_v28  ;;  %v368_v11 = vadd.f32 %v360_v20, %v343_v0  ;;  %v369_v12 = vadd.f32 %v361_v56, %v344_v30  ;;  %v408_v31 = vmul.f32 0.046875, %v2868_v24  ;;  %v2862_v56 = vld [vmem:[%s3726_s13 + $0x191] sm:$0xff]  ;;  %v2870_v0 = vld [vmem:[%s3726_s13 + $0x221] sm:$0xff] }
  0x4a   : > { %v409_v15 = vmul.f32 0.046875, %v3881_v63  ;;  %v610_v19 = vadd.f32 %v602_v37, %v586_v9  ;;  %v611_v21 = vadd.f32 %v603_v61, %v587_v41  ;;  %v433_v27 = vmul.f32 0.046875, %v3837_v62  ;;  %v2838_v62 = vld [vmem:[%s3726_s13 + $0x101] sm:$0xff] }
  0x4b   : > { %3112 = vmatmul.mubr.msk.bf16.vlgmr.msra.gmra.mrb[0].mxu0 %vm615_vm1, %v3888_v6  ;;  %v392_v25 = vadd.f32 %v384_v4, %v368_v11  ;;  %v393_v26 = vadd.f32 %v385_v5, %v369_v12  ;;  %v434_v47 = vmul.f32 0.046875, %v2814_v10  ;;  %v458_v34 = vmul.f32 0.140625, %v3840_v1 }
  0x4c   : > { %3120 = vmatpush3.bf16.msra.mxu0 %v783_v40  ;;  %641 = vst.msk [vmem:[#allocation2 + $0x41] sm:$0xff] %vm615_vm1, %v610_v19  ;;  %642 = vst.msk [vmem:[#allocation2 + $0x51] sm:$0xff] %vm615_vm1, %v611_v21  ;;  %v459_v38 = vmul.f32 0.140625, %v2822_v3  ;;  %v482_v46 = vmul.f32 0.140625, %v3844_v7  ;;  %v483_v18 = vmul.f32 0.140625, %v2830_v32  ;;  %v968_v33 = vpack.c.bf16 %v3877_v28, %v3860_v36  ;;  %v2815_v19 = vld [vmem:[%s3726_s13 + $0x80] sm:$0xff] }
  0x4d   : > { %3453 = vmatprep.subr.msk.bf16.mxu0 %vm679_vm0, %v3897_v16  ;;  %v416_v17 = vadd.f32 %v408_v31, %v392_v25  ;;  %v417_v51 = vadd.f32 %v409_v15, %v393_v26  ;;  %v239_v39 = vmul.f32 0.015625, %v2814_v10  ;;  %v264_v43 = vmul.f32 0.046875, %v2822_v3 }
  0x4e   : > { %v288_v45 = vmul.f32 0.046875, %v2830_v32  ;;  %v506_v44 = vmul.f32 0.046875, %v3849_v14  ;;  %v507_v23 = vmul.f32 0.046875, %v2838_v62  ;;  %v531_v7 = vmul.f32 0.015625, %v3853_v13 }
  0x4f   : > { %v441_v42 = vadd.f32 %v433_v27, %v416_v17  ;;  %v442_v22 = vadd.f32 %v434_v47, %v417_v51  ;;  %v272_v29 = vadd.f32 %v264_v43, %v239_v39  ;;  %v312_v49 = vmul.f32 0.015625, %v2838_v62  ;;  %v2823_v27 = vld [vmem:[%s3726_s13 + $0x110] sm:$0xff]  ;;  %v2831_v51 = vld [vmem:[%s3726_s13 + $0x81] sm:$0xff] }
  0x50   : > { %v532_v35 = vmul.f32 0.015625, %v2846_v52  ;;  %v337_v58 = vmul.f32 0.046875, %v2846_v52  ;;  %v556_v13 = vmul.f32 0.046875, %v3867_v48  ;;  %v557_v61 = vmul.f32 0.046875, %v2854_v57  ;;  %v2847_v62 = vld [vmem:[%s3726_s13 + $0x1a0] sm:$0xff]  ;;  %v3939_v43 = vld [vmem:[#allocation2 + $0x11] sm:$0xff] }
  0x51   : > { %v466_v60 = vadd.f32 %v458_v34, %v441_v42  ;;  %v467_v1 = vadd.f32 %v459_v38, %v442_v22  ;;  %v296_v20 = vadd.f32 %v288_v45, %v272_v29  ;;  %v362_v4 = vmul.f32 0.140625, %v2854_v57  ;;  %v756_v22 = vld [vmem:[#allocation2 + $0x1] sm:$0xff]  ;;  %v2855_v45 = vld [vmem:[%s3726_s13 + $0x230] sm:$0xff] }
  0x52   : > { %v580_v9 = vmul.f32 0.046875, %v3873_v53  ;;  %v581_v41 = vmul.f32 0.046875, %v2862_v56  ;;  %v386_v11 = vmul.f32 0.140625, %v2862_v56  ;;  %v604_v48 = vmul.f32 0.015625, %v3881_v63  ;;  %v2839_v63 = vld [vmem:[%s3726_s13 + $0x111] sm:$0xff] }
  0x53   : > { %v3917_v50 = vld [vmem:[#allocation2 + $0x40] sm:$0xff]  ;;  %v3919_v54 = vld [vmem:[#allocation2 + $0x50] sm:$0xff]  ;;  %v490_v24 = vadd.f32 %v482_v46, %v466_v60  ;;  %v491_v55 = vadd.f32 %v483_v18, %v467_v1  ;;  %v320_v30 = vadd.f32 %v312_v49, %v296_v20  ;;  %v605_v15 = vmul.f32 0.015625, %v2870_v0 }
  0x54   : > { %v3923_v14 = vpack.c.bf16 %v3919_v54, %v3917_v50  ;;  %v410_v3 = vmul.f32 0.046875, %v2870_v0  ;;  %v435_v32 = vmul.f32 0.046875, %v2815_v19  ;;  %v460_v38 = vmul.f32 0.140625, %v2823_v27  ;;  %v2863_v60 = vld [vmem:[%s3726_s13 + $0x1a1] sm:$0xff]  ;;  %v759_v56 = vld [vmem:[#allocation2 + $0x31] sm:$0xff] }
  0x55   : > { %v514_v59 = vadd.f32 %v506_v44, %v490_v24  ;;  %v515_v37 = vadd.f32 %v507_v23, %v491_v55  ;;  %v345_v10 = vadd.f32 %v337_v58, %v320_v30  ;;  %v484_v18 = vmul.f32 0.140625, %v2831_v51  ;;  %v2871_v24 = vld [vmem:[%s3726_s13 + $0x231] sm:$0xff]  ;;  %v758_v20 = vld [vmem:[#allocation2 + $0x21] sm:$0xff]  ;;  %s3586_s13 = smov [#allocation4]  }
  0x56   : > { %3115 = vmatprep.mubr.msk.bf16.mxu0 %vm615_vm1, %v3923_v14  ;;  %v508_v42 = vmul.f32 0.046875, %v2839_v63  ;;  %v533_v52 = vmul.f32 0.015625, %v2847_v62  ;;  %v764_v29 = vpack.c.bf16 %v3939_v43, %v756_v22  ;;  %v558_v57 = vmul.f32 0.046875, %v2855_v45  ;;  %v863_v19 = vld [vmem:[#allocation2 + $0x52] sm:$0xff]  ;;  %v2907_v22 = vld [vmem:[%s4311_s1 + $0x1c] sm:$0xf] }
  0x57   : > { %v539_v5 = vadd.f32 %v531_v7, %v514_v59  ;;  %v540_v40 = vadd.f32 %v532_v35, %v515_v37  ;;  %v370_v21 = vadd.f32 %v362_v4, %v345_v10  ;;  %v582_v35 = vmul.f32 0.046875, %v2863_v60  ;;  %v760_v37 = vld [vmem:[#allocation2 + $0x41] sm:$0xff]  ;;  %v1274_v60 = vld [vmem:[#allocation2 + $0x90] sm:$0xff]  ;;  %s3525_s14 = sshll.u32 %s3586_s13, 4  ;;  %s3526_s14 = int_to_ptr.vmem [resolvable:$false] %s3525_s14 }
  0x58   : > { %v606_v59 = vmul.f32 0.015625, %v2871_v24  ;;  %v3953_v0 = vpack.c.bf16 %v759_v56, %v758_v20  ;;  %v858_v10 = vld [vmem:[#allocation2 + $0x2] sm:$0xff]  ;;  %v1070_v28 = vpack.c.bf16 %v758_v20, %v3939_v43  ;;  %v3505_v24 = vld [vmem:[%s4313_s3 + $0x10] sm:$0xff]   ;;  %s3527_s15 = scalar_lea.vmem %s3526_s14, 2048  ;;  %p3528_p0 = scmp.lt.s32.totalorder %s4262_s8, %s3526_s14 }
  0x59   : > { %v564_v12 = vadd.f32 %v556_v13, %v539_v5  ;;  %v565_v31 = vadd.f32 %v557_v61, %v540_v40  ;;  %v394_v47 = vadd.f32 %v386_v11, %v370_v21  ;;  %v761_v13 = vld [vmem:[#allocation2 + $0x51] sm:$0xff]  ;;  %v885_v5 = vsel %vm679_vm0, %v3897_v16, 0  ;;  %v2887_v40 = vld [vmem:[%s4311_s1 + $0xc] sm:$0xf]  ;;  %p3529_p1 = scmp.lt.s32.totalorder %s3527_s15, %s3521_s12 }
  0x5a   : > { %v3955_v30 = vpack.c.bf16 %v761_v13, %v760_v37  ;;  %v859_v11 = vld [vmem:[#allocation2 + $0x12] sm:$0xff] }
  0x5b   : > { %v588_v25 = vadd.f32 %v580_v9, %v564_v12  ;;  %v589_v26 = vadd.f32 %v581_v41, %v565_v31  ;;  %v418_v34 = vadd.f32 %v410_v3, %v394_v47  ;;  %v866_v12 = vpack.c.bf16 %v859_v11, %v858_v10  ;;  %v860_v31 = vld [vmem:[#allocation2 + $0x22] sm:$0xff]  ;;  %p3530_p2 = por %p3529_p1, %p3528_p0 }
  0x5d   : > { %v612_v53 = vadd.f32 %v604_v48, %v588_v25  ;;  %v613_v17 = vadd.f32 %v605_v15, %v589_v26  ;;  %v443_v46 = vadd.f32 %v435_v32, %v418_v34  ;;  %v861_v48 = vld [vmem:[#allocation2 + $0x32] sm:$0xff]  ;;  %v862_v15 = vld [vmem:[#allocation2 + $0x42] sm:$0xff]  ;;  %v987_v25 = vsel %vm679_vm0, %v2887_v40, 0  ;;  %p3531_p3 = pnand %p3530_p2, %p3524_p13 }
  0x5e   : > { %v3973_v21 = vpack.c.bf16 %v861_v48, %v860_v31  ;;  %v3975_v3 = vpack.c.bf16 %v863_v19, %v862_v15  ;;  %v2892_v26 = vld [vmem:[%s4311_s1 + $0x10] sm:$0xf]  ;;  %v2897_v34 = vld [vmem:[%s4311_s1 + $0x14] sm:$0xf]  ;;  %v1173_v62 = vpack.c.bf16 %v862_v15, %v861_v48 }
  0x5f   : > { %643 = vst.msk [vmem:[#allocation2 + $0x61] sm:$0xff] %vm615_vm1, %v612_v53  ;;  %644 = vst.msk [vmem:[#allocation2 + $0x71] sm:$0xff] %vm615_vm1, %v613_v17  ;;  %v468_v39 = vadd.f32 %v460_v38, %v443_v46  ;;  %v969_v53 = vpack.c.bf16 %v3917_v50, %v3883_v8  ;;  %v1089_v51 = vsel %vm679_vm0, %v2892_v26, 0  ;;  %v1071_v8 = vpack.c.bf16 %v760_v37, %v759_v56 }
  0x60   : > { %v1191_v50 = vsel %vm679_vm0, %v2897_v34, 0 }
  0x61   : > { %v492_v44 = vadd.f32 %v484_v18, %v468_v39  ;;  %v1172_v18 = vpack.c.bf16 %v860_v31, %v859_v11 }
  0x63   : > { %v516_v7 = vadd.f32 %v508_v42, %v492_v44  ;;  %v1396_v44 = vsel %vm679_vm0, %v2907_v22, 0 }
  0x65   : > { %v541_v55 = vadd.f32 %v533_v52, %v516_v7  ;;  %v2912_v52 = vld [vmem:[%s4311_s1 + $0x20] sm:$0xf] }
  0x66   : > { %v660_v1 = vld [vmem:[#allocation2 + $0x60] sm:$0xff]  ;;  %v3943_v23 = vld [vmem:[#allocation2 + $0x70] sm:$0xff] }
  0x67   : > { %v3947_v49 = vpack.c.bf16 %v3943_v23, %v660_v1  ;;  %v566_v58 = vadd.f32 %v558_v57, %v541_v55  ;;  %v762_v9 = vld [vmem:[#allocation2 + $0x61] sm:$0xff]  ;;  %v763_v41 = vld [vmem:[#allocation2 + $0x71] sm:$0xff]  ;;  %v970_v17 = vpack.c.bf16 %v660_v1, %v3919_v54 }
  0x68   : > { %v3968_v16 = vpack.c.bf16 %v763_v41, %v762_v9  ;;  %v864_v27 = vld [vmem:[#allocation2 + $0x62] sm:$0xff]  ;;  %v865_v47 = vld [vmem:[#allocation2 + $0x72] sm:$0xff] }
  0x69   : > { %3116 = vmatmul.mubr.msk.bf16.gmra.mrb[4].mxu0 %vm615_vm1, %v3947_v49  ;;  %v590_v61 = vadd.f32 %v582_v35, %v566_v58  ;;  %v869_v32 = vpack.c.bf16 %v865_v47, %v864_v27  ;;  %v2902_v54 = vld [vmem:[%s4311_s1 + $0x18] sm:$0xf]  ;;  %v1174_v39 = vpack.c.bf16 %v864_v27, %v863_v19  ;;  %v3503_v57 = vld [vmem:[%s4313_s3] sm:$0xff]  }
  0x6a   : > { %3121 = vmatprep.mubr.msk.bf16.mxu0 %vm615_vm1, %v764_v29  ;;  %v1294_v42 = vsel %vm679_vm0, %v2902_v54, 0  ;;  %v1478_v29 = vld [vmem:[#allocation2 + $0x92] sm:$0xff]  ;;  %3199 = vmatprep.subr.bf16.mxu1 %v3503_v57  ;;  %v1628_v27 = vld [vmem:[#allocation3] sm:$0xff] }
  0x6b   : > { %v614_v4 = vadd.f32 %v606_v59, %v590_v61  ;;  %3200 = vmatpush3.bf16.msra.mxu1 %v3503_v57 }
  0x6d   : > { %645 = vst.msk [vmem:[#allocation2 + $0x81] sm:$0xff] %vm615_vm1, %v614_v4 }
  0x71   : > { %3122 = vmatmul.mubr.msk.bf16.vlgmr.msra.gmra.mrb[0].mxu0 %vm615_vm1, %v3953_v0 }
  0x72   : > { %3130 = vmatpush3.bf16.msra.mxu0 %v885_v5  ;;  %3125 = vmatprep.mubr.msk.bf16.mxu0 %vm615_vm1, %v3955_v30 }
  0x73   : > { %3454 = vmatprep.subr.msk.bf16.mxu0 %vm679_vm0, %v2887_v40 }
  0x74   : > { %v967_v38 = vld [vmem:[#allocation2 + $0x80] sm:$0xff] }
  0x75   : > { %v971_v36 = vpack.c.bf16 %v967_v38, %v3943_v23  ;;  %v1069_v63 = vld [vmem:[#allocation2 + $0x81] sm:$0xff]  ;;  %v1278_v1 = vpack.c.bf16 %v1274_v60, %v967_v38 }
  0x76   : > { %v1073_v46 = vpack.c.bf16 %v1069_v63, %v763_v41  ;;  %v1171_v43 = vld [vmem:[#allocation2 + $0x82] sm:$0xff] }
  0x77   : > { %v1175_v45 = vpack.c.bf16 %v1171_v43, %v865_v47  ;;  %v1482_v7 = vpack.c.bf16 %v1478_v29, %v1171_v43  ;;  %v1855_v29 = vld [vmem:[#allocation3 + $0x2] sm:$0xff] }
  0x79   : > { %3126 = vmatmul.mubr.msk.bf16.gmra.mrb[4].mxu0 %vm615_vm1, %v3968_v16 }
  0x7a   : > { %3131 = vmatprep.mubr.msk.bf16.mxu0 %vm615_vm1, %v866_v12 }
  0x81   : > { %3132 = vmatmul.mubr.msk.bf16.vlgmr.msra.gmra.mrb[0].mxu0 %vm615_vm1, %v3973_v21 }
  0x82   : > { %3140 = vmatpush3.bf16.msra.mxu0 %v987_v25  ;;  %3135 = vmatprep.mubr.msk.bf16.mxu0 %vm615_vm1, %v3975_v3 }
  0x83   : > { %3455 = vmatprep.subr.msk.bf16.mxu0 %vm679_vm0, %v2892_v26 }
  0x89   : > { %3136 = vmatmul.mubr.msk.bf16.gmra.mrb[4].mxu0 %vm615_vm1, %v869_v32 }
  0x8a   : > { %3141 = vmatprep.mubr.msk.bf16.mxu0 %vm615_vm1, %v968_v33  ;;  %v1072_v33 = vpack.c.bf16 %v762_v9, %v761_v13 }
  0x91   : > { %3142 = vmatmul.mubr.msk.bf16.vlgmr.msra.gmra.mrb[0].mxu0 %vm615_vm1, %v969_v53 }
  0x92   : > { %3150 = vmatpush3.bf16.msra.mxu0 %v1089_v51  ;;  %3145 = vmatprep.mubr.msk.bf16.mxu0 %vm615_vm1, %v970_v17 }
  0x93   : > { %3456 = vmatprep.subr.msk.bf16.mxu0 %vm679_vm0, %v2897_v34 }
  0x99   : > { %3146 = vmatmul.mubr.msk.bf16.gmra.mrb[4].mxu0 %vm615_vm1, %v971_v36 }
  0x9a   : > { %3151 = vmatprep.mubr.msk.bf16.mxu0 %vm615_vm1, %v1070_v28 }
  0xa1   : > { %3152 = vmatmul.mubr.msk.bf16.vlgmr.msra.gmra.mrb[0].mxu0 %vm615_vm1, %v1071_v8  ;;  %v3506_v8 = vld [vmem:[%s4313_s3 + $0x18] sm:$0xff]  }
  0xa2   : > { %3160 = vmatpush3.bf16.msra.mxu0 %v1191_v50  ;;  %3155 = vmatprep.mubr.msk.bf16.mxu0 %vm615_vm1, %v1072_v33  ;;  %v3507_v33 = vld [vmem:[%s4313_s3 + $0x20] sm:$0xff]  }
  0xa3   : > { %3457 = vmatprep.subr.msk.bf16.mxu0 %vm679_vm0, %v2902_v54 }
  0xa9   : > { %3156 = vmatmul.mubr.msk.bf16.gmra.mrb[4].mxu0 %vm615_vm1, %v1073_v46  ;;  %v1741_v46 = vld [vmem:[#allocation3 + $0x1] sm:$0xff] }
  0xaa   : > { %3161 = vmatprep.mubr.msk.bf16.mxu0 %vm615_vm1, %v1172_v18 }
  0xb1   : > { %3162 = vmatmul.mubr.msk.bf16.vlgmr.msra.gmra.mrb[0].mxu0 %vm615_vm1, %v1173_v62 }
  0xb2   : > { %3170 = vmatpush3.bf16.msra.mxu0 %v1294_v42  ;;  %3165 = vmatprep.mubr.msk.bf16.mxu0 %vm615_vm1, %v1174_v39 }
  0xb3   : > { %3458 = vmatprep.subr.msk.bf16.mxu0 %vm679_vm0, %v2907_v22 }
  0xb9   : > { %3166 = vmatmul.mubr.msk.bf16.gmra.mrb[4].mxu0 %vm615_vm1, %v1175_v45 }
  0xba   : > { %3171 = vmatprep.mubr.msk.bf16.mxu0 %vm615_vm1, %v3888_v6  ;;  %v1498_v6 = vsel %vm679_vm0, %v2912_v52, 0 }
  0xc1   : > { %3172 = vmatmul.mubr.msk.bf16.vlgmr.msra.gmra.mrb[0].mxu0 %vm615_vm1, %v3923_v14  ;;  %v1376_v14 = vld [vmem:[#allocation2 + $0x91] sm:$0xff] }
  0xc2   : > { %3180 = vmatpush3.bf16.msra.mxu0 %v1396_v44  ;;  %3175 = vmatprep.mubr.msk.bf16.mxu0 %vm615_vm1, %v3947_v49  ;;  %v1380_v23 = vpack.c.bf16 %v1376_v14, %v1069_v63  ;;  %v3504_v49 = vld [vmem:[%s4313_s3 + $0x8] sm:$0xff]   ;;  %v3509_v14 = vld [vmem:[%s4313_s3 + $0x30] sm:$0xff]  }
  0xc3   : > { %3459 = vmatprep.subr.msk.bf16.mxu0 %vm679_vm0, %v2912_v52  ;;  %3201 = vmatprep.subr.bf16.mxu1 %v3504_v49 }
  0xc4   : > { %3202 = vmatpush3.bf16.msra.mxu1 %v3504_v49 }
  0xc5   : > { %3211 = vmatprep.subr.bf16.mxu1 %v3505_v24 }
  0xc9   : > { %3176 = vmatmul.mubr.msk.bf16.gmra.mrb[4].mxu0 %vm615_vm1, %v1278_v1  ;;  %v3508_v1 = vld [vmem:[%s4313_s3 + $0x28] sm:$0xff]  }
  0xca   : > { %3181 = vmatprep.mubr.msk.bf16.mxu0 %vm615_vm1, %v3953_v0 }
  0xd1   : > { %3182 = vmatmul.mubr.msk.bf16.vlgmr.msra.gmra.mrb[0].mxu0 %vm615_vm1, %v3955_v30 }
  0xd2   : > { %3190 = vmatpush3.bf16.msra.mxu0 %v1498_v6  ;;  %3185 = vmatprep.mubr.msk.bf16.mxu0 %vm615_vm1, %v3968_v16 }
  0xd9   : > { %3186 = vmatmul.mubr.msk.bf16.gmra.mrb[4].mxu0 %vm615_vm1, %v1380_v23 }
  0xda   : > { %3191 = vmatprep.mubr.msk.bf16.mxu0 %vm615_vm1, %v3973_v21 }
  0xe1   : > { %3192 = vmatmul.mubr.msk.bf16.vlgmr.msra.gmra.mrb[0].mxu0 %vm615_vm1, %v3975_v3 }
  0xe2   : > { %3195 = vmatprep.mubr.msk.bf16.mxu0 %vm615_vm1, %v869_v32 }
  0xe9   : > { %3196 = vmatmul.mubr.msk.bf16.gmra.mrb[4].mxu0 %vm615_vm1, %v1482_v7 }
 0x1b4   : > { %v3193_v55 = vpop.f32.mrb[0].mxu0 }
 0x1b5   : > { %v3307_v35 = vadd.f32 %v3193_v55, %v2872_v2  ;;  %v1534_v20 = vpop.f32.mrb[1].mxu0 }
 0x1b6   : > { %v3308_v56 = vadd.f32 %v2872_v2, %v1534_v20  ;;  %v3194_v58 = vpop.f32.mrb[2].mxu0 }
 0x1b7   : > { %v1575_v59 = vmul.f32 0.01, %v3307_v35  ;;  %v3309_v37 = vadd.f32 %v3194_v58, %v2872_v2  ;;  %v1537_v13 = vpop.f32.mrb[3].mxu0  ;;  %v3510_v58 = vld [vmem:[%s4313_s3 + $0x38] sm:$0xff]  }
 0x1b8   : > { %v1573_v61 = vmul.f32 0.01, %v3308_v56  ;;  %v3310_v0 = vadd.f32 %v2872_v2, %v1537_v13 }
 0x1b9   : > { %v1583_v30 = vmax.f32 %v3307_v35, %v1575_v59  ;;  %v1576_v4 = vmul.f32 0.01, %v3309_v37 }
 0x1ba   : > { %v1581_v5 = vmax.f32 %v3308_v56, %v1573_v61  ;;  %v1574_v40 = vmul.f32 0.01, %v3310_v0 }
 0x1bb   : > { %1614 = vst.msk [vmem:[#allocation3 + $0x31] sm:$0xff] %vm1589_vm3, %v1583_v30  ;;  %v1584_v9 = vmax.f32 %v3309_v37, %v1576_v4  ;;  %v3511_v37 = vld [vmem:[%s4313_s3 + $0x40] sm:$0xff]  }
 0x1bc   : > { %1612 = vst.msk [vmem:[#allocation3 + $0x11] sm:$0xff] %vm1589_vm3, %v1581_v5  ;;  %v1582_v41 = vmax.f32 %v3310_v0, %v1574_v40  ;;  %v3197_v10 = vpop.f32.mrb[4].mxu0  ;;  %v3512_v5 = vld [vmem:[%s4313_s3 + $0x48] sm:$0xff]  }
 0x1bd   : > { %1615 = vst.msk [vmem:[#allocation3 + $0x41] sm:$0xff] %vm1589_vm3, %v1584_v9  ;;  %v3311_v11 = vadd.f32 %v3197_v10, %v2872_v2  ;;  %v1550_v16 = vpop.f32.mrb[5].mxu0  ;;  %v3513_v9 = vld [vmem:[%s4313_s3 + $0x50] sm:$0xff]  }
 0x1be   : > { %1613 = vst.msk [vmem:[#allocation3 + $0x21] sm:$0xff] %vm1589_vm3, %v1582_v41  ;;  %v3312_v12 = vadd.f32 %v2872_v2, %v1550_v16  ;;  %v3198_v31 = vpop.f32.mrb[6].mxu0 }
 0x1bf   : > { %v1579_v48 = vmul.f32 0.01, %v3311_v11  ;;  %v3313_v15 = vadd.f32 %v3198_v31, %v2872_v2  ;;  %v1553_v19 = vpop.f32.mrb[7].mxu0 }
 0x1c0   : > { %v1577_v21 = vmul.f32 0.01, %v3312_v12  ;;  %v3314_v3 = vadd.f32 %v2872_v2, %v1553_v19 }
 0x1c1   : > { %v1587_v25 = vmax.f32 %v3311_v11, %v1579_v48  ;;  %v1580_v26 = vmul.f32 0.01, %v3313_v15  ;;  %v3515_v48 = vld [vmem:[%s4313_s3 + $0x60] sm:$0xff]  }
 0x1c2   : > { %v1585_v47 = vmax.f32 %v3312_v12, %v1577_v21  ;;  %v1578_v32 = vmul.f32 0.01, %v3314_v3  ;;  %v4112_v36 = vld [vmem:[#allocation3 + $0x30] sm:$0xff]  ;;  %v3514_v12 = vld [vmem:[%s4313_s3 + $0x58] sm:$0xff]  }
 0x1c3   : > { %1618 = vst.msk [vmem:[#allocation3 + $0x71] sm:$0xff] %vm1589_vm3, %v1587_v25  ;;  %v1588_v53 = vmax.f32 %v3313_v15, %v1580_v26  ;;  %v4105_v17 = vld [vmem:[#allocation3 + $0x10] sm:$0xff]  ;;  %v3516_v25 = vld [vmem:[%s4313_s3 + $0x68] sm:$0xff]  }
 0x1c4   : > { %1616 = vst.msk [vmem:[#allocation3 + $0x51] sm:$0xff] %vm1589_vm3, %v1585_v47  ;;  %v1586_v51 = vmax.f32 %v3314_v3, %v1578_v32  ;;  %v1636_v34 = vpack.c.bf16 %v4105_v17, %v1628_v27  ;;  %v1632_v50 = vld [vmem:[#allocation3 + $0x40] sm:$0xff]  ;;  %v4130_v18 = vld [vmem:[#allocation3 + $0x11] sm:$0xff] }
 0x1c5   : > { %1619 = vst.msk [vmem:[#allocation3 + $0x81] sm:$0xff] %vm1589_vm3, %v1588_v53  ;;  %v4110_v38 = vld [vmem:[#allocation3 + $0x20] sm:$0xff]  ;;  %v1749_v22 = vpack.c.bf16 %v4130_v18, %v1741_v46  ;;  %v1744_v44 = vld [vmem:[#allocation3 + $0x31] sm:$0xff]  ;;  %v1978_v4 = vpack.c.bf16 %v1632_v50, %v4112_v36 }
 0x1c6   : > { %1617 = vst.msk [vmem:[#allocation3 + $0x61] sm:$0xff] %vm1589_vm3, %v1586_v51  ;;  %3203 = vmatprep.mubr.msk.bf16.mxu1 %vm1589_vm3, %v1636_v34  ;;  %v4118_v28 = vpack.c.bf16 %v4112_v36, %v4110_v38  ;;  %v1743_v43 = vld [vmem:[#allocation3 + $0x21] sm:$0xff]  ;;  %v1856_v7 = vld [vmem:[#allocation3 + $0x12] sm:$0xff]  ;;  %v1977_v30 = vpack.c.bf16 %v4110_v38, %v4105_v17 }
 0x1c7   : > { %v4143_v52 = vpack.c.bf16 %v1744_v44, %v1743_v43  ;;  %v1745_v60 = vld [vmem:[#allocation3 + $0x41] sm:$0xff]  ;;  %v1858_v35 = vld [vmem:[#allocation3 + $0x32] sm:$0xff]  ;;  %v2091_v11 = vpack.c.bf16 %v1743_v43, %v4130_v18 }
 0x1c8   : > { %3204 = vmatmul.mubr.msk.bf16.vlgmr.msra.gmra.mrb[0].mxu1 %vm1589_vm3, %v4118_v28  ;;  %v1857_v2 = vld [vmem:[#allocation3 + $0x22] sm:$0xff]  ;;  %v2092_v16 = vpack.c.bf16 %v1745_v60, %v1744_v44  ;;  %v3517_v27 = vld [vmem:[%s4313_s3 + $0x70] sm:$0xff]   ;;  %v3518_v53 = vld [vmem:[%s4313_s3 + $0x78] sm:$0xff]  }
 0x1c9   : > { %3212 = vmatpush3.bf16.msra.mxu1 %v3505_v24  ;;  %v1863_v24 = vpack.c.bf16 %v1856_v7, %v1855_v29  ;;  %v4162_v20 = vpack.c.bf16 %v1858_v35, %v1857_v2  ;;  %v1859_v56 = vld [vmem:[#allocation3 + $0x42] sm:$0xff]  ;;  %v2205_v21 = vpack.c.bf16 %v1857_v2, %v1856_v7  ;;  %v2319_v51 = vld [vmem:[#allocation3 + $0x90] sm:$0xff] }
 0x1ca   : > { %3213 = vmatprep.subr.bf16.mxu1 %v3506_v8  ;;  %v4132_v39 = vld [vmem:[#allocation3 + $0x70] sm:$0xff]  ;;  %v2206_v3 = vpack.c.bf16 %v1859_v56, %v1858_v35  ;;  %v3519_v17 = vld [vmem:[%s4313_s3 + $0x80] sm:$0xff]   ;;  %v3520_v38 = vld [vmem:[%s4313_s3 + $0x88] sm:$0xff]  }
 0x1cb   : > { %v1633_v54 = vld [vmem:[#allocation3 + $0x50] sm:$0xff] }
 0x1cc   : > { %v4128_v63 = vpack.c.bf16 %v1633_v54, %v1632_v50  ;;  %v1746_v45 = vld [vmem:[#allocation3 + $0x51] sm:$0xff]  ;;  %v1976_v41 = vld [vmem:[#allocation3 + $0x80] sm:$0xff] }
 0x1cd   : > { %v1634_v62 = vld [vmem:[#allocation3 + $0x60] sm:$0xff]  ;;  %3214 = vmatpush3.bf16.msra.mxu1 %v3506_v8  ;;  %v4148_v6 = vpack.c.bf16 %v1746_v45, %v1745_v60  ;;  %v1748_v57 = vld [vmem:[#allocation3 + $0x71] sm:$0xff]  ;;  %v1980_v10 = vpack.c.bf16 %v1976_v41, %v4132_v39  ;;  %v2323_v34 = vpack.c.bf16 %v2319_v51, %v1976_v41 }
 0x1ce   : > { %3207 = vmatprep.mubr.msk.bf16.mxu1 %vm1589_vm3, %v4128_v63  ;;  %v4137_v42 = vpack.c.bf16 %v4132_v39, %v1634_v62  ;;  %3223 = vmatprep.subr.bf16.mxu1 %v3507_v33  ;;  %v1747_v23 = vld [vmem:[#allocation3 + $0x61] sm:$0xff]  ;;  %v1860_v55 = vld [vmem:[#allocation3 + $0x52] sm:$0xff]  ;;  %v1979_v40 = vpack.c.bf16 %v1634_v62, %v1633_v54  ;;  %v2917_v50 = vld [vmem:[%s4314_s4] ss:$0 sm:$0xff] }
 0x1cf   : > { %v4157_v49 = vpack.c.bf16 %v1748_v57, %v1747_v23  ;;  %v4167_v59 = vpack.c.bf16 %v1860_v55, %v1859_v56  ;;  %v1861_v13 = vld [vmem:[#allocation3 + $0x62] sm:$0xff]  ;;  %v1862_v61 = vld [vmem:[#allocation3 + $0x72] sm:$0xff]  ;;  %v2093_v31 = vpack.c.bf16 %v1747_v23, %v1746_v45 }
 0x1d0   : > { %3208 = vmatmul.mubr.msk.bf16.gmra.mrb[4].mxu1 %vm1589_vm3, %v4137_v42  ;;  %v4176_v0 = vpack.c.bf16 %v1862_v61, %v1861_v13  ;;  %v2090_v15 = vld [vmem:[#allocation3 + $0x81] sm:$0xff]  ;;  %v2207_v26 = vpack.c.bf16 %v1861_v13, %v1860_v55  ;;  %v2433_v36 = vld [vmem:[#allocation3 + $0x91] sm:$0xff] }
 0x1d1   : > { %3215 = vmatprep.mubr.msk.bf16.mxu1 %vm1589_vm3, %v1749_v22  ;;  %v2094_v19 = vpack.c.bf16 %v2090_v15, %v1748_v57  ;;  %v2204_v47 = vld [vmem:[#allocation3 + $0x82] sm:$0xff]  ;;  %v2547_v8 = vld [vmem:[#allocation3 + $0x92] sm:$0xff] }
 0x1d2   : > { %v2208_v32 = vpack.c.bf16 %v2204_v47, %v1862_v61 }
 0x1d8   : > { %3216 = vmatmul.mubr.msk.bf16.vlgmr.msra.gmra.mrb[0].mxu1 %vm1589_vm3, %v4143_v52 }
 0x1d9   : > { %3224 = vmatpush3.bf16.msra.mxu1 %v3507_v33  ;;  %3219 = vmatprep.mubr.msk.bf16.mxu1 %vm1589_vm3, %v4148_v6  ;;  %v2551_v33 = vpack.c.bf16 %v2547_v8, %v2204_v47 }
 0x1da   : > { %3225 = vmatprep.subr.bf16.mxu1 %v3508_v1 }
 0x1dd   : > { %3226 = vmatpush3.bf16.msra.mxu1 %v3508_v1 }
 0x1de   : > { %3235 = vmatprep.subr.bf16.mxu1 %v3509_v14 }
 0x1e0   : > { %3220 = vmatmul.mubr.msk.bf16.gmra.mrb[4].mxu1 %vm1589_vm3, %v4157_v49 }
 0x1e1   : > { %3227 = vmatprep.mubr.msk.bf16.mxu1 %vm1589_vm3, %v1863_v24 }
 0x1e8   : > { %3228 = vmatmul.mubr.msk.bf16.vlgmr.msra.gmra.mrb[0].mxu1 %vm1589_vm3, %v4162_v20 }
 0x1e9   : > { %3236 = vmatpush3.bf16.msra.mxu1 %v3509_v14  ;;  %3231 = vmatprep.mubr.msk.bf16.mxu1 %vm1589_vm3, %v4167_v59 }
 0x1ea   : > { %3237 = vmatprep.subr.bf16.mxu1 %v3510_v58 }
 0x1ed   : > { %3238 = vmatpush3.bf16.msra.mxu1 %v3510_v58 }
 0x1ee   : > { %3247 = vmatprep.subr.bf16.mxu1 %v3511_v37 }
 0x1f0   : > { %3232 = vmatmul.mubr.msk.bf16.gmra.mrb[4].mxu1 %vm1589_vm3, %v4176_v0 }
 0x1f1   : > { %3239 = vmatprep.mubr.msk.bf16.mxu1 %vm1589_vm3, %v1977_v30 }
 0x1f8   : > { %3240 = vmatmul.mubr.msk.bf16.vlgmr.msra.gmra.mrb[0].mxu1 %vm1589_vm3, %v1978_v4 }
 0x1f9   : > { %3248 = vmatpush3.bf16.msra.mxu1 %v3511_v37  ;;  %3243 = vmatprep.mubr.msk.bf16.mxu1 %vm1589_vm3, %v1979_v40 }
 0x1fa   : > { %3249 = vmatprep.subr.bf16.mxu1 %v3512_v5 }
 0x1fd   : > { %3250 = vmatpush3.bf16.msra.mxu1 %v3512_v5 }
 0x1fe   : > { %3259 = vmatprep.subr.bf16.mxu1 %v3513_v9 }
 0x200   : > { %3244 = vmatmul.mubr.msk.bf16.gmra.mrb[4].mxu1 %vm1589_vm3, %v1980_v10 }
 0x201   : > { %3251 = vmatprep.mubr.msk.bf16.mxu1 %vm1589_vm3, %v2091_v11 }
 0x208   : > { %3252 = vmatmul.mubr.msk.bf16.vlgmr.msra.gmra.mrb[0].mxu1 %vm1589_vm3, %v2092_v16 }
 0x209   : > { %3260 = vmatpush3.bf16.msra.mxu1 %v3513_v9  ;;  %3255 = vmatprep.mubr.msk.bf16.mxu1 %vm1589_vm3, %v2093_v31 }
 0x20a   : > { %3261 = vmatprep.subr.bf16.mxu1 %v3514_v12 }
 0x20d   : > { %3262 = vmatpush3.bf16.msra.mxu1 %v3514_v12 }
 0x20e   : > { %3271 = vmatprep.subr.bf16.mxu1 %v3515_v48 }
 0x210   : > { %3256 = vmatmul.mubr.msk.bf16.gmra.mrb[4].mxu1 %vm1589_vm3, %v2094_v19 }
 0x211   : > { %3263 = vmatprep.mubr.msk.bf16.mxu1 %vm1589_vm3, %v2205_v21 }
 0x218   : > { %3264 = vmatmul.mubr.msk.bf16.vlgmr.msra.gmra.mrb[0].mxu1 %vm1589_vm3, %v2206_v3 }
 0x219   : > { %3272 = vmatpush3.bf16.msra.mxu1 %v3515_v48  ;;  %3267 = vmatprep.mubr.msk.bf16.mxu1 %vm1589_vm3, %v2207_v26 }
 0x21a   : > { %3273 = vmatprep.subr.bf16.mxu1 %v3516_v25 }
 0x21d   : > { %3274 = vmatpush3.bf16.msra.mxu1 %v3516_v25 }
 0x21e   : > { %3283 = vmatprep.subr.bf16.mxu1 %v3517_v27 }
 0x220   : > { %3268 = vmatmul.mubr.msk.bf16.gmra.mrb[4].mxu1 %vm1589_vm3, %v2208_v32 }
 0x221   : > { %3275 = vmatprep.mubr.msk.bf16.mxu1 %vm1589_vm3, %v4118_v28  ;;  %v2437_v28 = vpack.c.bf16 %v2433_v36, %v2090_v15 }
 0x228   : > { %3276 = vmatmul.mubr.msk.bf16.vlgmr.msra.gmra.mrb[0].mxu1 %vm1589_vm3, %v4128_v63 }
 0x229   : > { %3284 = vmatpush3.bf16.msra.mxu1 %v3517_v27  ;;  %3279 = vmatprep.mubr.msk.bf16.mxu1 %vm1589_vm3, %v4137_v42 }
 0x22a   : > { %3285 = vmatprep.subr.bf16.mxu1 %v3518_v53 }
 0x22d   : > { %3286 = vmatpush3.bf16.msra.mxu1 %v3518_v53 }
 0x22e   : > { %3295 = vmatprep.subr.bf16.mxu1 %v3519_v17 }
 0x230   : > { %3280 = vmatmul.mubr.msk.bf16.gmra.mrb[4].mxu1 %vm1589_vm3, %v2323_v34 }
 0x231   : > { %3287 = vmatprep.mubr.msk.bf16.mxu1 %vm1589_vm3, %v4143_v52 }
 0x238   : > { %3288 = vmatmul.mubr.msk.bf16.vlgmr.msra.gmra.mrb[0].mxu1 %vm1589_vm3, %v4148_v6 }
 0x239   : > { %3296 = vmatpush3.bf16.msra.mxu1 %v3519_v17  ;;  %3291 = vmatprep.mubr.msk.bf16.mxu1 %vm1589_vm3, %v4157_v49 }
 0x23a   : > { %3297 = vmatprep.subr.bf16.mxu1 %v3520_v38 }
 0x23d   : > { %3298 = vmatpush3.bf16.msra.mxu1 %v3520_v38 }
 0x240   : > { %3292 = vmatmul.mubr.msk.bf16.gmra.mrb[4].mxu1 %vm1589_vm3, %v2437_v28 }
 0x241   : > { %3299 = vmatprep.mubr.msk.bf16.mxu1 %vm1589_vm3, %v4162_v20 }
 0x248   : > { %3300 = vmatmul.mubr.msk.bf16.vlgmr.msra.gmra.mrb[0].mxu1 %vm1589_vm3, %v4167_v59 }
 0x249   : > { %3303 = vmatprep.mubr.msk.bf16.mxu1 %vm1589_vm3, %v4176_v0 }
 0x250   : > { %3304 = vmatmul.mubr.msk.bf16.gmra.mrb[4].mxu1 %vm1589_vm3, %v2551_v33 }
 0x31b   : > { %v3301_v54 = vpop.f32.mrb[0].mxu1 }
 0x31c   : > { %v3315_v63 = vadd.f32 %v3301_v54, %v2917_v50  ;;  %v2615_v46 = vpop.f32.mrb[1].mxu1 }
 0x31d   : > { %v3316_v18 = vadd.f32 %v2917_v50, %v2615_v46  ;;  %v3302_v62 = vpop.f32.mrb[2].mxu1 }
 0x31e   : > { %v2656_v39 = vmul.f32 0.01, %v3315_v63  ;;  %v3317_v42 = vadd.f32 %v3302_v62, %v2917_v50  ;;  %v2618_v22 = vpop.f32.mrb[3].mxu1 }
 0x31f   : > { %v2654_v43 = vmul.f32 0.01, %v3316_v18  ;;  %v3318_v45 = vadd.f32 %v2917_v50, %v2618_v22 }
 0x320   : > { %v2664_v44 = vmax.f32 %v3315_v63, %v2656_v39  ;;  %v2657_v52 = vmul.f32 0.01, %v3317_v42 }
 0x321   : > { %v2662_v60 = vmax.f32 %v3316_v18, %v2654_v43  ;;  %v2655_v1 = vmul.f32 0.01, %v3318_v45 }
 0x322   : > { %2672 = vst.msk [vmem:[%s217_s6 + $0x10] sm:$0xff] %vm1589_vm3, %v2664_v44  ;;  %v2665_v6 = vmax.f32 %v3317_v42, %v2657_v52 }
 0x323   : > { %2670 = vst.msk [vmem:[%s217_s6] sm:$0xff] %vm1589_vm3, %v2662_v60  ;;  %v2663_v14 = vmax.f32 %v3318_v45, %v2655_v1  ;;  %v3305_v23 = vpop.f32.mrb[4].mxu1 }
 0x324   : > { %2673 = vst.msk [vmem:[%s217_s6 + $0x18] sm:$0xff] %vm1589_vm3, %v2665_v6  ;;  %v3319_v29 = vadd.f32 %v3305_v23, %v2917_v50  ;;  %v2631_v7 = vpop.f32.mrb[5].mxu1 }
 0x325   : > { %2671 = vst.msk [vmem:[%s217_s6 + $0x8] sm:$0xff] %vm1589_vm3, %v2663_v14  ;;  %v3320_v57 = vadd.f32 %v2917_v50, %v2631_v7  ;;  %v3306_v49 = vpop.f32.mrb[6].mxu1 }
 0x326   : > { %v2660_v24 = vmul.f32 0.01, %v3319_v29  ;;  %v3321_v2 = vadd.f32 %v3306_v49, %v2917_v50  ;;  %v2634_v55 = vpop.f32.mrb[7].mxu1 }
 0x327   : > { %v2658_v35 = vmul.f32 0.01, %v3320_v57  ;;  %v3322_v20 = vadd.f32 %v2917_v50, %v2634_v55 }
 0x328   : > { %v2668_v56 = vmax.f32 %v3319_v29, %v2660_v24  ;;  %v2661_v58 = vmul.f32 0.01, %v3321_v2 }
 0x329   : > { %v2666_v59 = vmax.f32 %v3320_v57, %v2658_v35  ;;  %v2659_v37 = vmul.f32 0.01, %v3322_v20 }
 0x32a   : > { %2676 = vst.msk [vmem:[%s217_s6 + $0x30] sm:$0xff] %vm1589_vm3, %v2668_v56  ;;  %v2669_v13 = vmax.f32 %v3321_v2, %v2661_v58 }
 0x32b   : > { %2674 = vst.msk [vmem:[%s217_s6 + $0x20] sm:$0xff] %vm1589_vm3, %v2666_v59  ;;  %v2667_v61 = vmax.f32 %v3322_v20, %v2659_v37 }
 0x32c   : > { %2677 = vst.msk [vmem:[%s217_s6 + $0x38] sm:$0xff] %vm1589_vm3, %v2669_v13 }
 0x32d   : > { %2675 = vst.msk [vmem:[%s217_s6 + $0x28] sm:$0xff] %vm1589_vm3, %v2667_v61 }
 0x32e   : > { %3534 = shalt.err (!%p3531_p3)
}
 0x32f   : > { %s3535_s16 = scalar_lea.hbm %s4260_s11, 1024  ;;  %s3539_s25 = scalar_lea.hbm %s4315_s5, 2048 }
 0x330   : > { %p3536_p4 = scmp.ne.s32.totalorder %s4260_s11, %s3535_s16  ;;  %p3540_p9 = scmp.lt.u32.totalorder %s4260_s11, %s4315_s5 }
 0x331   : > { %p3541_p10 = scmp.lt.u32.totalorder %s3539_s25, %s3535_s16  ;;  %p3543_p12 = scmp.lt.u32.totalorder %s3535_s16, %s4260_s11 }
 0x332   : > { %p3537_p7 = pnand %p3536_p4, %p3657_p5 }
 0x333   : > { %p3542_p11 = por %p3541_p10, %p3540_p9 }
 0x334   : > { %p3538_p8 = pneg %p3537_p7 }
 0x335   : > { %p3544_p13 = por %p3543_p12, %p3542_p11 }
 0x337   : > { %p3545_p0 = pnand %p3544_p13, %p3538_p8 }
 0x339   : > { %3548 = shalt.err (!%p3545_p0)
}
 0x33a   : > { %s3587_s6 = smov 128   ;;  %s3588_s7 = smov 8  }
 0x33b   : > { %3461 = dma.vmem_to_hbm [thread:$0]  (%p3657_p5), %s4262_s8, 1024, %s4260_s11, %s4269_s22, %s3587_s6, %s3587_s6, %s3588_s7  }
 0x33c PF: > { %p3467_p1 = scmp.ge.s32.totalorder %s3583_s21, 2  ;;  %s2707_s9 = sand.u32 1, %s3571_s18  }
 0x33d   : > { %s2708_s10 = scalar_lea.sflag [#allocation5], %s2707_s9 }
 0x33e   : > { %p3464_p2 = pnand %p3467_p1, %p3661_p6 }
 0x340   : > { %3566 = dma.done.wait (!%p3464_p2), %s2708_s10, 1024  }
 0x341   : > { %3568 = vsyncadd (!%p3464_p2), %s2708_s10, 4294966272  ;;  %p15_p3 = scmp.ge.s32.totalorder %s3644_s24, 4   ;;  %s4318_s18 = smov %s3575_s19 }
 0x342   : > { %s4319_s19 = smov %s3579_s20  ;;  %s4320_s20 = smov %s3655_s27 }
 0x343   : > { %s4321_s21 = smov %s3644_s24  ;;  %17 = sbr.rel (!%p15_p3) target bundleno = 3 (0x3), region = 102 }
 0x34a   :  { %2713 = vsyncpa [#allocation5], 1 }
 0x34b   :  { %2715 = vsyncpa [#allocation5 + $0x1], 1 }

</bundles_post_ra>
